<compile_context>
chip_gen: v6e
topology: v6e:2x2x1
jax: 0.10.0
libtpu: 0.0.40
codegen_flags: <defaults>
</compile_context>

<pallas_src>
import functools

import jax
import jax.numpy as jnp
from jax import lax
from jax.experimental import pallas as pl
from jax.experimental.pallas import tpu as pltpu


def _lovasz_kernel(cnt_ref,        # SMEM (C,) int32   scalar-prefetched fg counts
                   err_tile_ref,   # (1, 1, tb) f32    column-tile errors e_b
                   fg_row_ref,     # (1, 1, n_pad) f32 full per-class fg (lane-major)
                   err_sub_ref,    # (1, ta, nat) f32  blocked transpose of errors
                   loss_ref,       # (1, 1, 128) f32   per-class loss (out)
                   wgt_ref,        # (1, 1, 128) f32   per-class has_fg (out)
                   acc_ref,        # VMEM (8, tb) f32  [cum ; k] accumulator
                   loss_acc_ref,   # VMEM (1, 1, 128) f32 loss accumulator over t
                   *, ta, tb):
    c = pl.program_id(0)           # class index
    t = pl.program_id(1)           # column-tile index
    n_col = pl.num_programs(1)

    n_pad = fg_row_ref.shape[-1]
    nat = n_pad // ta              # static number of row tiles

    # Per-class foreground count (precomputed in the wrapper, scalar prefetch):
    # avoids an N-wide cross-lane reduce on every column-tile grid step.
    gts_i = cnt_ref[c]
    has_fg = gts_i > 0
    gts = jnp.where(has_fg, gts_i, 1).astype(jnp.float32)

    # Column tile: global columns [b0, b0 + tb).
    b0 = pl.multiple_of(t * tb, tb)
    e_b = err_tile_ref[...][0]                         # (1, tb) f32
    f_b = fg_row_ref[:, :, pl.ds(b0, tb)][0]           # (1, tb) f32

    # Loop invariants (hoisted out of the row-tile loop).
    row_id8 = lax.broadcasted_iota(jnp.int32, (8, ta), 0)
    base8 = jnp.where(row_id8 == 1, 1.0, 0.0)          # row 1 = ones, rest zeros
    jj = lax.broadcasted_iota(jnp.int32, (1, tb), 1) + b0
    ii_loc = lax.broadcasted_iota(jnp.int32, (ta, 1), 0)

    acc_ref[...] = jnp.zeros(acc_ref.shape, acc_ref.dtype)

    # Static (unrolled) row-tile loop.  Exactly one pl.when branch fires per
    # iteration; off-diagonal tiles pay only 1 compare + 1 select per element.
    for a_t in range(nat):
        a0 = a_t * ta                                   # python int
        e_a = err_sub_ref[:, :, a_t:a_t + 1][0]         # (ta, 1) f32, static slice
        f_a = fg_row_ref[:, :, a0:a0 + ta][0]           # (1, ta) f32, static slice
        # Row 0 = fg, row 1 = ones, rows 2..7 = zeros (constant part hoisted).
        lhs = jnp.where(row_id8 == 0, jnp.broadcast_to(f_a, (8, ta)), base8)

        def _accumulate(comp_b, lhs=lhs):
            comp = comp_b.astype(jnp.float32)           # single select, exact 0/1
            acc_ref[...] += jnp.dot(lhs, comp,
                                    preferred_element_type=jnp.float32)

        is_before = (a0 + ta) <= b0      # every a strictly before every b
        is_after = a0 >= (b0 + tb)       # every a strictly after every b

        @pl.when(is_before)
        def _():
            _accumulate(e_a >= e_b)      # tie (a < b) => counted

        @pl.when(is_after)
        def _():
            _accumulate(e_a > e_b)       # tie (a > b) => not counted

        @pl.when(jnp.logical_not(jnp.logical_or(is_before, is_after)))
        def _():
            tie = jnp.logical_and(e_a == e_b, (ii_loc + a0) <= jj)
            _accumulate(jnp.logical_or(e_a > e_b, tie))

    cum = acc_ref[0:1, :]     # (1, tb) cumsum(fg_sorted) at the position of b
    k = acc_ref[1:2, :]       # (1, tb) 1-based sorted position of b

    # lovasz_grad: jaccard at position k minus jaccard at position k - 1.
    jac = 1.0 - (gts - cum) / (gts + k - cum)
    cum_p = cum - f_b
    jac_p = 1.0 - (gts - cum_p) / (gts + (k - 1.0) - cum_p)
    grad = jac - jac_p

    loss_t = jnp.where(has_fg, jnp.sum(grad * e_b), 0.0)

    @pl.when(t == 0)
    def _():
        loss_acc_ref[...] = jnp.zeros(loss_acc_ref.shape, loss_acc_ref.dtype)

    loss_acc_ref[...] += loss_t

    # Outputs are written once, at the last column tile of this class.
    @pl.when(t == n_col - 1)
    def _():
        loss_ref[...] = loss_acc_ref[...]
        wgt_ref[...] = (jnp.zeros(wgt_ref.shape, wgt_ref.dtype)
                        + jnp.where(has_fg, 1.0, 0.0))


def _round_up(x, m):
    return ((x + m - 1) // m) * m


def lovasz_softmax_loss(logits, target, *, tile_a=256, tile_b=512):
    """logits: (N, C) float, target: (N,) int.  Returns scalar float32 loss."""
    n, num_classes = logits.shape

    # O(N*C) preprocessing hoisted out of the per-class / per-tile hot path.
    probs = jax.nn.softmax(logits.astype(jnp.float32), axis=-1)
    onehot = (target.astype(jnp.int32)[:, None]
              == jnp.arange(num_classes, dtype=jnp.int32)[None, :]
              ).astype(jnp.float32)                                   # (N, C)
    err_nc = jnp.abs(onehot - probs)                                  # (N, C)
    cls_count = jnp.sum(onehot, axis=0).astype(jnp.int32)             # (C,)

    # Tile selection: lane-aligned (multiples of 128), ta <= tb, tb % ta == 0,
    # N padded to a multiple of tb (hence also of ta).
    n128 = _round_up(n, 128)
    tb = min(max(128, (tile_b // 128) * 128), n128)
    ta = min(max(128, (tile_a // 128) * 128), tb)
    tb = (tb // ta) * ta
    n_pad = _round_up(n, tb)
    nat = n_pad // ta

    # Padded pixels carry err = 0 and fg = 0: they sort strictly after every
    # real pixel (equal error, larger index) and carry no error mass, so the
    # ranks/cumsums of real pixels and the loss are exact.
    if n_pad != n:
        pad = ((0, n_pad - n), (0, 0))
        err_nc = jnp.pad(err_nc, pad)
        onehot = jnp.pad(onehot, pad)

    # Lane-major per-class rows (exact f32 relayouts of err_nc / onehot).
    err_cn = jnp.transpose(err_nc).reshape(num_classes, 1, n_pad)     # (C,1,N)
    fg_cn = jnp.transpose(onehot).reshape(num_classes, 1, n_pad)      # (C,1,N)
    # Blocked transpose: err_sub[c, i, j] = err[j*ta + i, c].  Gives each row
    # tile's errors along sublanes via a static lane slice in the kernel — no
    # in-kernel transpose and no lane-padded (N, C) resident block.
    err_sub = jnp.transpose(err_nc.reshape(nat, ta, num_classes), (2, 1, 0))

    grid = (num_classes, n_pad // tb)
    kernel = functools.partial(_lovasz_kernel, ta=ta, tb=tb)

    # NOTE: resident VMEM per class is ~8*N bytes (fg row + err_sub) plus the
    # O(ta*tb) tiles; for very large N on v7x set vmem_limit_bytes explicitly.
    loss_c, wgt_c = pl.pallas_call(
        kernel,
        out_shape=(jax.ShapeDtypeStruct((num_classes, 1, 128), jnp.float32),
                   jax.ShapeDtypeStruct((num_classes, 1, 128), jnp.float32)),
        grid_spec=pltpu.PrefetchScalarGridSpec(
            num_scalar_prefetch=1,
            grid=grid,
            in_specs=[
                pl.BlockSpec((1, 1, tb), lambda c, t, cnt: (c, 0, t)),
                pl.BlockSpec((1, 1, n_pad), lambda c, t, cnt: (c, 0, 0)),
                pl.BlockSpec((1, ta, nat), lambda c, t, cnt: (c, 0, 0)),
            ],
            out_specs=(
                pl.BlockSpec((1, 1, 128), lambda c, t, cnt: (c, 0, 0)),
                pl.BlockSpec((1, 1, 128), lambda c, t, cnt: (c, 0, 0)),
            ),
            scratch_shapes=[
                pltpu.VMEM((8, tb), jnp.float32),
                pltpu.VMEM((1, 1, 128), jnp.float32),
            ],
        ),
        compiler_params=pltpu.CompilerParams(
            dimension_semantics=("parallel", "arbitrary")),
    )(cls_count, err_cn, fg_cn, err_sub)

    total = jnp.sum(loss_c[:, 0, 0])
    weight = jnp.sum(wgt_c[:, 0, 0])
    # Guard the division: if no class has any foreground, return 0 instead of
    # NaN (the PyTorch reference would raise in that case).
    return total / jnp.maximum(weight, 1.0)


def lovasz_softmax_ref(logits, target):
    """Pure-JAX replication of the PyTorch module (ignore_label=None)."""
    probs = jax.nn.softmax(logits.astype(jnp.float32), axis=-1)
    num_classes = probs.shape[1]
    onehot = jax.nn.one_hot(target, num_classes, dtype=jnp.float32)
    losses = []
    for cc in range(num_classes):
        fg = onehot[:, cc]
        if float(jnp.sum(fg)) == 0.0:
            continue
        errors = jnp.abs(fg - probs[:, cc])
        order = jnp.argsort(-errors)
        errors_sorted = errors[order]
        fg_sorted = fg[order]
        gts = jnp.sum(fg_sorted)
        inter = gts - jnp.cumsum(fg_sorted)
        union = gts + jnp.cumsum(1.0 - fg_sorted)
        jac = 1.0 - inter / union
        jac = jnp.concatenate([jac[:1], jac[1:] - jac[:-1]])
        losses.append(jnp.dot(jac, errors_sorted))
    return jnp.mean(jnp.stack(losses))


if __name__ == "__main__":
    key = jax.random.PRNGKey(0)
    k1, k2 = jax.random.split(key)
    B, C, H, W = 2, 4, 16, 16

    # Synthetic "conv output" in NCHW and integer labels in BHW.
    logits_nchw = jax.random.normal(k1, (B, C, H, W), dtype=jnp.float32)
    target_bhw = jax.random.randint(k2, (B, H, W), 0, C, dtype=jnp.int32)

    # Glue matching the PyTorch module: flatten to (N, C), N = B*H*W = 512.
    logits = jnp.transpose(logits_nchw, (0, 2, 3, 1)).reshape(-1, C)
    target = target_bhw.reshape(-1)

    ref = lovasz_softmax_ref(logits, target)

    # Default tiles (ta=256, tb=512): one column tile, two (overlapping) row
    # tiles -> exercises the general tie-break branch.
    loss = lovasz_softmax_loss(logits, target)
    jax.block_until_ready(loss)
    assert abs(float(loss) - float(ref)) < 1e-4, (float(loss), float(ref))

    # Small tiles (ta=tb=128): 4 column x 4 row tiles -> exercises all three
    # comparator specializations (before / diagonal / after) plus the
    # cross-tile loss accumulation and finalize-at-last-tile path.
    loss_small = lovasz_softmax_loss(logits, target, tile_a=128, tile_b=128)
    jax.block_until_ready(loss_small)
    assert abs(float(loss_small) - float(ref)) < 1e-4, (
        float(loss_small), float(ref))

    print("KERNEL_OK")
</pallas_src>

<mosaic_0001>
module attributes {stable_mosaic.version = 11 : i64} {
  func.func @_lovasz_kernel(%arg0: i32, %arg1: i32, %arg2: memref<4xi32, #tpu.memory_space<smem>>, %arg3: memref<1x1x512xf32, #tpu.memory_space<vmem>>, %arg4: memref<1x1x512xf32, #tpu.memory_space<vmem>>, %arg5: memref<1x256x2xf32, #tpu.memory_space<vmem>>, %arg6: memref<1x1x128xf32, #tpu.memory_space<vmem>>, %arg7: memref<1x1x128xf32, #tpu.memory_space<vmem>>, %arg8: memref<8x512xf32, #tpu.memory_space<vmem>>, %arg9: memref<1x1x128xf32, #tpu.memory_space<vmem>>) attributes {dimension_semantics = [#tpu.dimension_semantics<parallel>, #tpu.dimension_semantics<arbitrary>], iteration_bounds = array<i64: 4, 1>, scalar_prefetch = 1 : i64, scratch_operands = 2 : i64, tpu.core_type = #tpu.core_type<tc>, window_params = [{transform_indices = @transform_0, window_bounds = array<i64: 1, 1, 512>}, {transform_indices = @transform_1, window_bounds = array<i64: 1, 1, 512>}, {transform_indices = @transform_2, window_bounds = array<i64: 1, 256, 2>}, {transform_indices = @transform_3, window_bounds = array<i64: 1, 1, 128>}, {transform_indices = @transform_4, window_bounds = array<i64: 1, 1, 128>}]} {
    %0 = arith.index_cast %arg0 : i32 to index
    %1 = memref.load %arg2[%0] : memref<4xi32, #tpu.memory_space<smem>>
    %c0_i32 = arith.constant 0 : i32
    %2 = arith.cmpi sgt, %1, %c0_i32 : i32
    %c1_i32 = arith.constant 1 : i32
    %3 = arith.select %2, %1, %c1_i32 : i32
    %4 = arith.sitofp %3 : i32 to f32
    %c512_i32 = arith.constant 512 : i32
    %5 = arith.muli %arg1, %c512_i32 : i32
    %6 = tpu.assume_multiple %5, 512 : i32
    %c0 = arith.constant 0 : index
    %c0_0 = arith.constant 0 : index
    %c0_1 = arith.constant 0 : index
    %7 = vector.load %arg3[%c0, %c0_0, %c0_1] : memref<1x1x512xf32, #tpu.memory_space<vmem>>, vector<1x1x512xf32>
    %8 = vector.shape_cast %7 : vector<1x1x512xf32> to vector<1x512xf32>
    %c0_2 = arith.constant 0 : index
    %c0_3 = arith.constant 0 : index
    %9 = arith.index_cast %6 : i32 to index
    %10 = vector.load %arg4[%c0_2, %c0_3, %9] : memref<1x1x512xf32, #tpu.memory_space<vmem>>, vector<1x1x512xf32>
    %11 = vector.shape_cast %10 : vector<1x1x512xf32> to vector<1x512xf32>
    %12 = tpu.iota {dimensions = array<i32: 0>} : vector<8x256xi32>
    %c1_i32_4 = arith.constant 1 : i32
    %13 = vector.broadcast %c1_i32_4 : i32 to vector<8x256xi32>
    %14 = arith.cmpi eq, %12, %13 : vector<8x256xi32>
    %cst = arith.constant 1.000000e+00 : f32
    %cst_5 = arith.constant 0.000000e+00 : f32
    %15 = vector.broadcast %cst : f32 to vector<8x256xf32>
    %16 = vector.broadcast %cst_5 : f32 to vector<8x256xf32>
    %17 = arith.select %14, %15, %16 : vector<8x256xi1>, vector<8x256xf32>
    %18 = tpu.iota {dimensions = array<i32: 1>} : vector<1x512xi32>
    %19 = vector.broadcast %6 : i32 to vector<1x512xi32>
    %20 = arith.addi %18, %19 : vector<1x512xi32>
    %21 = tpu.iota {dimensions = array<i32: 0>} : vector<256x1xi32>
    %cst_6 = arith.constant 0.000000e+00 : f32
    %22 = vector.broadcast %cst_6 : f32 to vector<8x512xf32>
    %c0_7 = arith.constant 0 : index
    %c0_8 = arith.constant 0 : index
    %23 = vector.load %arg8[%c0_7, %c0_8] : memref<8x512xf32, #tpu.memory_space<vmem>>, vector<8x512xf32>
    tpu.vector_store %arg8[%c0_7, %c0_8], %22 {strides = array<i32>} : memref<8x512xf32, #tpu.memory_space<vmem>>, vector<8x512xf32>,
    %c0_9 = arith.constant 0 : index
    %c0_10 = arith.constant 0 : index
    %c0_11 = arith.constant 0 : index
    %24 = vector.load %arg5[%c0_9, %c0_10, %c0_11] : memref<1x256x2xf32, #tpu.memory_space<vmem>>, vector<1x256x1xf32>
    %25 = vector.shape_cast %24 : vector<1x256x1xf32> to vector<256x1xf32>
    %c0_12 = arith.constant 0 : index
    %c0_13 = arith.constant 0 : index
    %c0_14 = arith.constant 0 : index
    %26 = vector.load %arg4[%c0_12, %c0_13, %c0_14] : memref<1x1x512xf32, #tpu.memory_space<vmem>>, vector<1x1x256xf32>
    %27 = vector.shape_cast %26 : vector<1x1x256xf32> to vector<1x256xf32>
    %c0_i32_15 = arith.constant 0 : i32
    %28 = vector.broadcast %c0_i32_15 : i32 to vector<8x256xi32>
    %29 = arith.cmpi eq, %12, %28 : vector<8x256xi32>
    %30 = vector.shape_cast %27 : vector<1x256xf32> to vector<1x256xf32>
    %31 = vector.broadcast %30 : vector<1x256xf32> to vector<8x256xf32>
    %32 = arith.select %29, %31, %17 : vector<8x256xi1>, vector<8x256xf32>
    %c256_i32 = arith.constant 256 : i32
    %33 = arith.cmpi sge, %6, %c256_i32 : i32
    %c512_i32_16 = arith.constant 512 : i32
    %34 = arith.addi %6, %c512_i32_16 : i32
    %c0_i32_17 = arith.constant 0 : i32
    %35 = arith.cmpi sle, %34, %c0_i32_17 : i32
    %36 = arith.extui %33 : i1 to i32
    %c0_i32_18 = arith.constant 0 : i32
    %37 = arith.cmpi ne, %36, %c0_i32_18 : i32
    scf.if %37 {
      %102 = vector.broadcast %25 : vector<256x1xf32> to vector<256x512xf32>
      %103 = vector.broadcast %8 : vector<1x512xf32> to vector<256x512xf32>
      %104 = arith.cmpf oge, %102, %103 : vector<256x512xf32>
      %105 = arith.extui %104 : vector<256x512xi1> to vector<256x512xi32>
      %106 = arith.sitofp %105 : vector<256x512xi32> to vector<256x512xf32>
      %c0_52 = arith.constant 0 : index
      %c0_53 = arith.constant 0 : index
      %107 = vector.load %arg8[%c0_52, %c0_53] : memref<8x512xf32, #tpu.memory_space<vmem>>, vector<8x512xf32>
      %cst_54 = arith.constant dense<0.000000e+00> : vector<8x512xf32>
      %108 = tpu.matmul %32, %106, %cst_54 {dimension_numbers = #tpu.dot_dimension_numbers<[1], [0], [0], [1], [0, 0, 1, 1], [], []>} : vector<8x256xf32>, vector<256x512xf32>, vector<8x512xf32> -> vector<8x512xf32>
      %109 = arith.addf %107, %108 : vector<8x512xf32>
      %c0_55 = arith.constant 0 : index
      %c0_56 = arith.constant 0 : index
      %110 = vector.load %arg8[%c0_55, %c0_56] : memref<8x512xf32, #tpu.memory_space<vmem>>, vector<8x512xf32>
      tpu.vector_store %arg8[%c0_55, %c0_56], %109 {strides = array<i32>} : memref<8x512xf32, #tpu.memory_space<vmem>>, vector<8x512xf32>,
    } else {
    }
    %38 = arith.extui %35 : i1 to i32
    %c0_i32_19 = arith.constant 0 : i32
    %39 = arith.cmpi ne, %38, %c0_i32_19 : i32
    scf.if %39 {
      %102 = vector.broadcast %25 : vector<256x1xf32> to vector<256x512xf32>
      %103 = vector.broadcast %8 : vector<1x512xf32> to vector<256x512xf32>
      %104 = arith.cmpf ogt, %102, %103 : vector<256x512xf32>
      %105 = arith.extui %104 : vector<256x512xi1> to vector<256x512xi32>
      %106 = arith.sitofp %105 : vector<256x512xi32> to vector<256x512xf32>
      %c0_52 = arith.constant 0 : index
      %c0_53 = arith.constant 0 : index
      %107 = vector.load %arg8[%c0_52, %c0_53] : memref<8x512xf32, #tpu.memory_space<vmem>>, vector<8x512xf32>
      %cst_54 = arith.constant dense<0.000000e+00> : vector<8x512xf32>
      %108 = tpu.matmul %32, %106, %cst_54 {dimension_numbers = #tpu.dot_dimension_numbers<[1], [0], [0], [1], [0, 0, 1, 1], [], []>} : vector<8x256xf32>, vector<256x512xf32>, vector<8x512xf32> -> vector<8x512xf32>
      %109 = arith.addf %107, %108 : vector<8x512xf32>
      %c0_55 = arith.constant 0 : index
      %c0_56 = arith.constant 0 : index
      %110 = vector.load %arg8[%c0_55, %c0_56] : memref<8x512xf32, #tpu.memory_space<vmem>>, vector<8x512xf32>
      tpu.vector_store %arg8[%c0_55, %c0_56], %109 {strides = array<i32>} : memref<8x512xf32, #tpu.memory_space<vmem>>, vector<8x512xf32>,
    } else {
    }
    %40 = arith.ori %33, %35 : i1
    %true = arith.constant true
    %41 = arith.xori %40, %true : i1
    %42 = arith.extui %41 : i1 to i32
    %c0_i32_20 = arith.constant 0 : i32
    %43 = arith.cmpi ne, %42, %c0_i32_20 : i32
    scf.if %43 {
      %102 = vector.broadcast %25 : vector<256x1xf32> to vector<256x512xf32>
      %103 = vector.broadcast %8 : vector<1x512xf32> to vector<256x512xf32>
      %104 = arith.cmpf oeq, %102, %103 : vector<256x512xf32>
      %c0_i32_52 = arith.constant 0 : i32
      %105 = vector.broadcast %c0_i32_52 : i32 to vector<256x1xi32>
      %106 = arith.addi %21, %105 : vector<256x1xi32>
      %107 = vector.broadcast %106 : vector<256x1xi32> to vector<256x512xi32>
      %108 = vector.broadcast %20 : vector<1x512xi32> to vector<256x512xi32>
      %109 = arith.cmpi sle, %107, %108 : vector<256x512xi32>
      %110 = arith.andi %104, %109 : vector<256x512xi1>
      %111 = vector.broadcast %25 : vector<256x1xf32> to vector<256x512xf32>
      %112 = vector.broadcast %8 : vector<1x512xf32> to vector<256x512xf32>
      %113 = arith.cmpf ogt, %111, %112 : vector<256x512xf32>
      %114 = arith.ori %113, %110 : vector<256x512xi1>
      %115 = arith.extui %114 : vector<256x512xi1> to vector<256x512xi32>
      %116 = arith.sitofp %115 : vector<256x512xi32> to vector<256x512xf32>
      %c0_53 = arith.constant 0 : index
      %c0_54 = arith.constant 0 : index
      %117 = vector.load %arg8[%c0_53, %c0_54] : memref<8x512xf32, #tpu.memory_space<vmem>>, vector<8x512xf32>
      %cst_55 = arith.constant dense<0.000000e+00> : vector<8x512xf32>
      %118 = tpu.matmul %32, %116, %cst_55 {dimension_numbers = #tpu.dot_dimension_numbers<[1], [0], [0], [1], [0, 0, 1, 1], [], []>} : vector<8x256xf32>, vector<256x512xf32>, vector<8x512xf32> -> vector<8x512xf32>
      %119 = arith.addf %117, %118 : vector<8x512xf32>
      %c0_56 = arith.constant 0 : index
      %c0_57 = arith.constant 0 : index
      %120 = vector.load %arg8[%c0_56, %c0_57] : memref<8x512xf32, #tpu.memory_space<vmem>>, vector<8x512xf32>
      tpu.vector_store %arg8[%c0_56, %c0_57], %119 {strides = array<i32>} : memref<8x512xf32, #tpu.memory_space<vmem>>, vector<8x512xf32>,
    } else {
    }
    %c0_21 = arith.constant 0 : index
    %c0_22 = arith.constant 0 : index
    %c1 = arith.constant 1 : index
    %44 = vector.load %arg5[%c0_21, %c0_22, %c1] : memref<1x256x2xf32, #tpu.memory_space<vmem>>, vector<1x256x1xf32>
    %45 = vector.shape_cast %44 : vector<1x256x1xf32> to vector<256x1xf32>
    %c0_23 = arith.constant 0 : index
    %c0_24 = arith.constant 0 : index
    %c256 = arith.constant 256 : index
    %46 = vector.load %arg4[%c0_23, %c0_24, %c256] : memref<1x1x512xf32, #tpu.memory_space<vmem>>, vector<1x1x256xf32>
    %47 = vector.shape_cast %46 : vector<1x1x256xf32> to vector<1x256xf32>
    %c0_i32_25 = arith.constant 0 : i32
    %48 = vector.broadcast %c0_i32_25 : i32 to vector<8x256xi32>
    %49 = arith.cmpi eq, %12, %48 : vector<8x256xi32>
    %50 = vector.shape_cast %47 : vector<1x256xf32> to vector<1x256xf32>
    %51 = vector.broadcast %50 : vector<1x256xf32> to vector<8x256xf32>
    %52 = arith.select %49, %51, %17 : vector<8x256xi1>, vector<8x256xf32>
    %c512_i32_26 = arith.constant 512 : i32
    %53 = arith.cmpi sge, %6, %c512_i32_26 : i32
    %c512_i32_27 = arith.constant 512 : i32
    %54 = arith.addi %6, %c512_i32_27 : i32
    %c256_i32_28 = arith.constant 256 : i32
    %55 = arith.cmpi sle, %54, %c256_i32_28 : i32
    %56 = arith.extui %53 : i1 to i32
    %c0_i32_29 = arith.constant 0 : i32
    %57 = arith.cmpi ne, %56, %c0_i32_29 : i32
    scf.if %57 {
      %102 = vector.broadcast %45 : vector<256x1xf32> to vector<256x512xf32>
      %103 = vector.broadcast %8 : vector<1x512xf32> to vector<256x512xf32>
      %104 = arith.cmpf oge, %102, %103 : vector<256x512xf32>
      %105 = arith.extui %104 : vector<256x512xi1> to vector<256x512xi32>
      %106 = arith.sitofp %105 : vector<256x512xi32> to vector<256x512xf32>
      %c0_52 = arith.constant 0 : index
      %c0_53 = arith.constant 0 : index
      %107 = vector.load %arg8[%c0_52, %c0_53] : memref<8x512xf32, #tpu.memory_space<vmem>>, vector<8x512xf32>
      %cst_54 = arith.constant dense<0.000000e+00> : vector<8x512xf32>
      %108 = tpu.matmul %52, %106, %cst_54 {dimension_numbers = #tpu.dot_dimension_numbers<[1], [0], [0], [1], [0, 0, 1, 1], [], []>} : vector<8x256xf32>, vector<256x512xf32>, vector<8x512xf32> -> vector<8x512xf32>
      %109 = arith.addf %107, %108 : vector<8x512xf32>
      %c0_55 = arith.constant 0 : index
      %c0_56 = arith.constant 0 : index
      %110 = vector.load %arg8[%c0_55, %c0_56] : memref<8x512xf32, #tpu.memory_space<vmem>>, vector<8x512xf32>
      tpu.vector_store %arg8[%c0_55, %c0_56], %109 {strides = array<i32>} : memref<8x512xf32, #tpu.memory_space<vmem>>, vector<8x512xf32>,
    } else {
    }
    %58 = arith.extui %55 : i1 to i32
    %c0_i32_30 = arith.constant 0 : i32
    %59 = arith.cmpi ne, %58, %c0_i32_30 : i32
    scf.if %59 {
      %102 = vector.broadcast %45 : vector<256x1xf32> to vector<256x512xf32>
      %103 = vector.broadcast %8 : vector<1x512xf32> to vector<256x512xf32>
      %104 = arith.cmpf ogt, %102, %103 : vector<256x512xf32>
      %105 = arith.extui %104 : vector<256x512xi1> to vector<256x512xi32>
      %106 = arith.sitofp %105 : vector<256x512xi32> to vector<256x512xf32>
      %c0_52 = arith.constant 0 : index
      %c0_53 = arith.constant 0 : index
      %107 = vector.load %arg8[%c0_52, %c0_53] : memref<8x512xf32, #tpu.memory_space<vmem>>, vector<8x512xf32>
      %cst_54 = arith.constant dense<0.000000e+00> : vector<8x512xf32>
      %108 = tpu.matmul %52, %106, %cst_54 {dimension_numbers = #tpu.dot_dimension_numbers<[1], [0], [0], [1], [0, 0, 1, 1], [], []>} : vector<8x256xf32>, vector<256x512xf32>, vector<8x512xf32> -> vector<8x512xf32>
      %109 = arith.addf %107, %108 : vector<8x512xf32>
      %c0_55 = arith.constant 0 : index
      %c0_56 = arith.constant 0 : index
      %110 = vector.load %arg8[%c0_55, %c0_56] : memref<8x512xf32, #tpu.memory_space<vmem>>, vector<8x512xf32>
      tpu.vector_store %arg8[%c0_55, %c0_56], %109 {strides = array<i32>} : memref<8x512xf32, #tpu.memory_space<vmem>>, vector<8x512xf32>,
    } else {
    }
    %60 = arith.ori %53, %55 : i1
    %true_31 = arith.constant true
    %61 = arith.xori %60, %true_31 : i1
    %62 = arith.extui %61 : i1 to i32
    %c0_i32_32 = arith.constant 0 : i32
    %63 = arith.cmpi ne, %62, %c0_i32_32 : i32
    scf.if %63 {
      %102 = vector.broadcast %45 : vector<256x1xf32> to vector<256x512xf32>
      %103 = vector.broadcast %8 : vector<1x512xf32> to vector<256x512xf32>
      %104 = arith.cmpf oeq, %102, %103 : vector<256x512xf32>
      %c256_i32_52 = arith.constant 256 : i32
      %105 = vector.broadcast %c256_i32_52 : i32 to vector<256x1xi32>
      %106 = arith.addi %21, %105 : vector<256x1xi32>
      %107 = vector.broadcast %106 : vector<256x1xi32> to vector<256x512xi32>
      %108 = vector.broadcast %20 : vector<1x512xi32> to vector<256x512xi32>
      %109 = arith.cmpi sle, %107, %108 : vector<256x512xi32>
      %110 = arith.andi %104, %109 : vector<256x512xi1>
      %111 = vector.broadcast %45 : vector<256x1xf32> to vector<256x512xf32>
      %112 = vector.broadcast %8 : vector<1x512xf32> to vector<256x512xf32>
      %113 = arith.cmpf ogt, %111, %112 : vector<256x512xf32>
      %114 = arith.ori %113, %110 : vector<256x512xi1>
      %115 = arith.extui %114 : vector<256x512xi1> to vector<256x512xi32>
      %116 = arith.sitofp %115 : vector<256x512xi32> to vector<256x512xf32>
      %c0_53 = arith.constant 0 : index
      %c0_54 = arith.constant 0 : index
      %117 = vector.load %arg8[%c0_53, %c0_54] : memref<8x512xf32, #tpu.memory_space<vmem>>, vector<8x512xf32>
      %cst_55 = arith.constant dense<0.000000e+00> : vector<8x512xf32>
      %118 = tpu.matmul %52, %116, %cst_55 {dimension_numbers = #tpu.dot_dimension_numbers<[1], [0], [0], [1], [0, 0, 1, 1], [], []>} : vector<8x256xf32>, vector<256x512xf32>, vector<8x512xf32> -> vector<8x512xf32>
      %119 = arith.addf %117, %118 : vector<8x512xf32>
      %c0_56 = arith.constant 0 : index
      %c0_57 = arith.constant 0 : index
      %120 = vector.load %arg8[%c0_56, %c0_57] : memref<8x512xf32, #tpu.memory_space<vmem>>, vector<8x512xf32>
      tpu.vector_store %arg8[%c0_56, %c0_57], %119 {strides = array<i32>} : memref<8x512xf32, #tpu.memory_space<vmem>>, vector<8x512xf32>,
    } else {
    }
    %c0_33 = arith.constant 0 : index
    %c0_34 = arith.constant 0 : index
    %64 = vector.load %arg8[%c0_33, %c0_34] : memref<8x512xf32, #tpu.memory_space<vmem>>, vector<1x512xf32>
    %c1_35 = arith.constant 1 : index
    %c0_36 = arith.constant 0 : index
    %65 = vector.load %arg8[%c1_35, %c0_36] : memref<8x512xf32, #tpu.memory_space<vmem>>, vector<1x512xf32>
    %66 = vector.broadcast %4 : f32 to vector<1x512xf32>
    %67 = arith.subf %66, %64 : vector<1x512xf32>
    %68 = vector.broadcast %4 : f32 to vector<1x512xf32>
    %69 = arith.addf %68, %65 : vector<1x512xf32>
    %70 = arith.subf %69, %64 : vector<1x512xf32>
    %71 = arith.divf %67, %70 : vector<1x512xf32>
    %cst_37 = arith.constant 1.000000e+00 : f32
    %72 = vector.broadcast %cst_37 : f32 to vector<1x512xf32>
    %73 = arith.subf %72, %71 : vector<1x512xf32>
    %74 = arith.subf %64, %11 : vector<1x512xf32>
    %75 = vector.broadcast %4 : f32 to vector<1x512xf32>
    %76 = arith.subf %75, %74 : vector<1x512xf32>
    %cst_38 = arith.constant 1.000000e+00 : f32
    %77 = vector.broadcast %cst_38 : f32 to vector<1x512xf32>
    %78 = arith.subf %65, %77 : vector<1x512xf32>
    %79 = vector.broadcast %4 : f32 to vector<1x512xf32>
    %80 = arith.addf %79, %78 : vector<1x512xf32>
    %81 = arith.subf %80, %74 : vector<1x512xf32>
    %82 = arith.divf %76, %81 : vector<1x512xf32>
    %cst_39 = arith.constant 1.000000e+00 : f32
    %83 = vector.broadcast %cst_39 : f32 to vector<1x512xf32>
    %84 = arith.subf %83, %82 : vector<1x512xf32>
    %85 = arith.subf %73, %84 : vector<1x512xf32>
    %86 = arith.mulf %85, %8 : vector<1x512xf32>
    %87 = vector.shape_cast %86 : vector<1x512xf32> to vector<1x1x512xf32>
    %cst_40 = arith.constant dense<0.000000e+00> : vector<1xf32>
    %88 = vector.multi_reduction <add>, %87, %cst_40 [1, 2] : vector<1x1x512xf32> to vector<1xf32>
    %89 = vector.shape_cast %88 : vector<1xf32> to vector<1x1x1xf32>
    %90 = vector.extract %89[0, 0, 0] : f32 from vector<1x1x1xf32>
    %cst_41 = arith.constant 0.000000e+00 : f32
    %91 = arith.select %2, %90, %cst_41 : f32
    %c0_i32_42 = arith.constant 0 : i32
    %92 = arith.cmpi eq, %arg1, %c0_i32_42 : i32
    %93 = arith.extui %92 : i1 to i32
    %c0_i32_43 = arith.constant 0 : i32
    %94 = arith.cmpi ne, %93, %c0_i32_43 : i32
    scf.if %94 {
      %cst_52 = arith.constant 0.000000e+00 : f32
      %102 = vector.broadcast %cst_52 : f32 to vector<1x1x128xf32>
      %c0_53 = arith.constant 0 : index
      %c0_54 = arith.constant 0 : index
      %c0_55 = arith.constant 0 : index
      %103 = vector.load %arg9[%c0_53, %c0_54, %c0_55] : memref<1x1x128xf32, #tpu.memory_space<vmem>>, vector<1x1x128xf32>
      tpu.vector_store %arg9[%c0_53, %c0_54, %c0_55], %102 {strides = array<i32>} : memref<1x1x128xf32, #tpu.memory_space<vmem>>, vector<1x1x128xf32>,
    } else {
    }
    %c0_44 = arith.constant 0 : index
    %c0_45 = arith.constant 0 : index
    %c0_46 = arith.constant 0 : index
    %95 = vector.load %arg9[%c0_44, %c0_45, %c0_46] : memref<1x1x128xf32, #tpu.memory_space<vmem>>, vector<1x1x128xf32>
    %96 = vector.broadcast %91 : f32 to vector<1x1x128xf32>
    %97 = arith.addf %95, %96 : vector<1x1x128xf32>
    %c0_47 = arith.constant 0 : index
    %c0_48 = arith.constant 0 : index
    %c0_49 = arith.constant 0 : index
    %98 = vector.load %arg9[%c0_47, %c0_48, %c0_49] : memref<1x1x128xf32, #tpu.memory_space<vmem>>, vector<1x1x128xf32>
    tpu.vector_store %arg9[%c0_47, %c0_48, %c0_49], %97 {strides = array<i32>} : memref<1x1x128xf32, #tpu.memory_space<vmem>>, vector<1x1x128xf32>,
    %c0_i32_50 = arith.constant 0 : i32
    %99 = arith.cmpi eq, %arg1, %c0_i32_50 : i32
    %100 = arith.extui %99 : i1 to i32
    %c0_i32_51 = arith.constant 0 : i32
    %101 = arith.cmpi ne, %100, %c0_i32_51 : i32
    scf.if %101 {
      %c0_52 = arith.constant 0 : index
      %c0_53 = arith.constant 0 : index
      %c0_54 = arith.constant 0 : index
      %102 = vector.load %arg9[%c0_52, %c0_53, %c0_54] : memref<1x1x128xf32, #tpu.memory_space<vmem>>, vector<1x1x128xf32>
      %c0_55 = arith.constant 0 : index
      %c0_56 = arith.constant 0 : index
      %c0_57 = arith.constant 0 : index
      %103 = vector.load %arg6[%c0_55, %c0_56, %c0_57] : memref<1x1x128xf32, #tpu.memory_space<vmem>>, vector<1x1x128xf32>
      tpu.vector_store %arg6[%c0_55, %c0_56, %c0_57], %102 {strides = array<i32>} : memref<1x1x128xf32, #tpu.memory_space<vmem>>, vector<1x1x128xf32>,
      %cst_58 = arith.constant 0.000000e+00 : f32
      %104 = vector.broadcast %cst_58 : f32 to vector<1x1x128xf32>
      %cst_59 = arith.constant 1.000000e+00 : f32
      %cst_60 = arith.constant 0.000000e+00 : f32
      %105 = arith.select %2, %cst_59, %cst_60 : f32
      %106 = vector.broadcast %105 : f32 to vector<1x1x128xf32>
      %107 = arith.addf %104, %106 : vector<1x1x128xf32>
      %c0_61 = arith.constant 0 : index
      %c0_62 = arith.constant 0 : index
      %c0_63 = arith.constant 0 : index
      %108 = vector.load %arg7[%c0_61, %c0_62, %c0_63] : memref<1x1x128xf32, #tpu.memory_space<vmem>>, vector<1x1x128xf32>
      tpu.vector_store %arg7[%c0_61, %c0_62, %c0_63], %107 {strides = array<i32>} : memref<1x1x128xf32, #tpu.memory_space<vmem>>, vector<1x1x128xf32>,
    } else {
    }
    return
  }
  func.func @transform_0(%arg0: i32, %arg1: i32, %arg2: memref<4xi32, #tpu.memory_space<smem>>) -> (i32, i32, i32) {
    %c0_i32 = arith.constant 0 : i32
    %c0_i32_0 = arith.constant 0 : i32
    return %arg0, %c0_i32, %arg1 : i32, i32, i32
  }
  func.func @transform_1(%arg0: i32, %arg1: i32, %arg2: memref<4xi32, #tpu.memory_space<smem>>) -> (i32, i32, i32) {
    %c0_i32 = arith.constant 0 : i32
    %c0_i32_0 = arith.constant 0 : i32
    %c0_i32_1 = arith.constant 0 : i32
    return %arg0, %c0_i32, %c0_i32_0 : i32, i32, i32
  }
  func.func @transform_2(%arg0: i32, %arg1: i32, %arg2: memref<4xi32, #tpu.memory_space<smem>>) -> (i32, i32, i32) {
    %c0_i32 = arith.constant 0 : i32
    %c0_i32_0 = arith.constant 0 : i32
    %c0_i32_1 = arith.constant 0 : i32
    return %arg0, %c0_i32, %c0_i32_0 : i32, i32, i32
  }
  func.func @transform_3(%arg0: i32, %arg1: i32, %arg2: memref<4xi32, #tpu.memory_space<smem>>) -> (i32, i32, i32) {
    %c0_i32 = arith.constant 0 : i32
    %c0_i32_0 = arith.constant 0 : i32
    %c0_i32_1 = arith.constant 0 : i32
    return %arg0, %c0_i32, %c0_i32_0 : i32, i32, i32
  }
  func.func @transform_4(%arg0: i32, %arg1: i32, %arg2: memref<4xi32, #tpu.memory_space<smem>>) -> (i32, i32, i32) {
    %c0_i32 = arith.constant 0 : i32
    %c0_i32_0 = arith.constant 0 : i32
    %c0_i32_1 = arith.constant 0 : i32
    return %arg0, %c0_i32, %c0_i32_0 : i32, i32, i32
  }
}

</mosaic_0001>

<bundles_post_ra>
// kernel: tpu_custom_call.1
= control target key start
LH: loop header
LB: loop body
LE: loop exit
PB: predicated region body
PF: predicated region fallthrough
CT: control target
= control target key end

     0   :  { %s9802_s0 = inlined_call_operand.vmem [shape: s32[4], index: 0, kind: input, shape index: {}]   ;;  %s9803_s1 = inlined_call_operand.vmem [shape: f32[4,1,512], index: 1, kind: input, shape index: {}]   ;;  %s9804_s2 = inlined_call_operand.vmem [shape: f32[4,1,512], index: 2, kind: input, shape index: {}]   ;;  %s9805_s3 = inlined_call_operand.vmem [shape: f32[4,256,2], index: 3, kind: input, shape index: {}]   ;;  %s9806_s4 = inlined_call_operand.hbm [shape: f32[4,1,128], index: 4, kind: output, shape index: {0}]   ;;  %s9807_s5 = inlined_call_operand.hbm [shape: f32[4,1,128], index: 5, kind: output, shape index: {1}]  }
   0x1   :  { %s11_s20 = sshll.u32 %s9802_s0, 4  ;;  %s12_s20 = int_to_ptr.vmem [resolvable:$true] %s11_s20 }
   0x2   :  { %s7674_s21 = scalar_lea.vmem %s12_s20, 16  ;;  %p7679_p1 = scmp.lt.s32.totalorder %s12_s20, %s12_s20 }
   0x3   :  { %p7675_p0 = scmp.ne.s32.totalorder %s12_s20, %s7674_s21  ;;  %p7680_p2 = scmp.lt.s32.totalorder %s7674_s21, %s7674_s21 }
   0x5   :  { %p7681_p3 = por %p7680_p2, %p7679_p1 }
   0x7   :  { %p7682_p4 = pnand %p7681_p3, %p7675_p0 }
   0x9   :  { %7685 = shalt.err (!%p7682_p4)  }
   0xa   :  { %s7796_s22 = smov [#allocation5]  }
   0xb   :  { %14 = dma.vmem_to_smem %s12_s20, 16, %s7796_s22, [#allocation4] }
   0xc   :  { %7762 = dma.done.wait [#allocation4], 16 }
   0xd   :  { %7763 = vsyncadd [#allocation4], 4294967280 }
   0xe   :  { %16 = sfence }
   0xf   :  { %17 = vsyncpa [#allocation7], 0 }
  0x10   :  { %19 = vsyncpa [#allocation7 + $0x1], 0 }
  0x11   :  { %20 = vsyncpa [#allocation9], 0 }
  0x12   :  { %22 = vsyncpa [#allocation9 + $0x1], 0  ;;  %s7836_s23 = smov 0   ;;  %s7838_s0 = smov 0  }
  0x13   :  { %s7840_s24 = smov 0   ;;  %s7842_s25 = smov 0  }
  0x14   :  { %s7844_s26 = smov 0   ;;  %s7846_s27 = smov 0  }
  0x15 LB: > { %s6047_s28 = sadd.s32 4294967295, %s7794_s27   ;;  %s6048_s29 = sadd.s32 4294967294, %s7794_s27   ;;  %s7794_s27 = sphi %s7846_s27, %s28_s27   ;;  %s7790_s26 = sphi %s7844_s26, %s9816_s26   ;;  %s7786_s25 = sphi %s7842_s25, %s9815_s25   ;;  %s7782_s24 = sphi %s7840_s24, %s9814_s24   ;;  %s7778_s0 = sphi %s7838_s0, %s9813_s0   ;;  %s7774_s23 = sphi %s7836_s23, %s9812_s23  }
  0x16   : > { %s40_s30 = sadd.s32 1, %s7790_s26  ;;  %s127_s6 = sadd.s32 1, %s7782_s24 }
  0x17   : > { %p42_p5 = scmp.ge.s32.totalorder %s40_s30, 4  ;;  %p137_p6 = scmp.ne.s32.totalorder %s7782_s24, %s7778_s0 }
  0x18   : > { %p138_p7 = scmp.eq.s32.totalorder %s6047_s28, 3  ;;  %p143_p8 = scmp.ne.s32.totalorder %s7778_s0, %s7774_s23 }
  0x19   : > { %s9818_s30 = smov (%p42_p5, %s40_s30), 0  ;;  %p144_p10 = scmp.eq.s32.totalorder %s6048_s29, 3 }
  0x1a   : > { %p7876_p9 = por %p138_p7, %p137_p6  ;;  %s124_s8 = ssub.s32 %s7790_s26, %s9818_s30 }
  0x1b   : > { %p6051_p11 = scmp.ge.s32.totalorder %s7794_s27, 1  ;;  %p125_p12 = scmp.eq.s32.totalorder %s124_s8, 0 }
  0x1c   : > { %p7883_p13 = por %p144_p10, %p143_p8  ;;  %p215_p0 = scmp.lt.s32.totalorder %s7794_s27, 5 }
  0x1d   : > { %s7889_s10 = scalar_select %p125_p12, %s7782_s24, %s127_s6  }
  0x1e   : > { %p216_p1 = pnand %p6051_p11, %p215_p0 }
  0x1f   : > { %p257_p2 = scmp.lt.s32.totalorder (!%p216_p1), %s7786_s25, 3  ;;  %s9714_s28 = sld [smem:[#allocation5 + %s7786_s25]] (!%p216_p1) }
  0x20   : > { %219 = sbr.rel (%p216_p1) target bundleno = 860 (0x35c), region = 32  ;;  %s9729_s8 = sand.u32 (!%p216_p1), 1, %s7778_s0  }
  0x21   : > { %s255_s13 = scalar_lea.vmem (!%p216_p1), [#allocation8], %s9729_s8  ;;  %s5903_s18 = scalar_lea.sflag (!%p216_p1), [#allocation9], %s9729_s8 }
  0x22   : > { %s5928_s17 = sshll.u32 (!%p216_p1), %s255_s13, 4  ;;  %s7801_s20 = smov (!%p216_p1), [#allocation8]   ;;  %s5929_s17 = int_to_ptr.vmem [resolvable:$true] %s5928_s17 }
  0x23   : > { %s7690_s21 = sshll.u32 (!%p216_p1), %s7801_s20, 4  ;;  %s7691_s21 = int_to_ptr.vmem [resolvable:$false] %s7690_s21 }
  0x24   : > { %p7693_p7 = scmp.lt.s32.totalorder (!%p216_p1), %s5929_s17, %s7691_s21 }
  0x25   : > { %v7797_v0 = vmov 0   ;;  %s7893_s11 = scalar_select %p257_p2, %s7786_s25, 3  ;;  %v7798_v33 = vmov 1   ;;  %v284_v34 = vlaneseq  ;;  %v7799_v49 = vmov 1.0  }
  0x26   : > { %7666 = vset.pattern.permute.xlu1 %v7797_v0  ;;  %7665 = vset.pattern.permute.xlu0 %v7797_v0  ;;  %p9808_p3 = scmp.gt.s32.totalorder %s9714_s28, 0 }
  0x27   : > { %s7597_s12 = sshll.u32 %s7893_s11, 8  ;;  %s6052_s16 = sshll.u32 %s7893_s11, 2  ;;  %v7954_v35 = vshrl.u32 %v284_v34, 7  ;;  %v7972_v41 = vand.u32 127, %v284_v34 }
  0x28   : > { %s7899_s15 = scalar_lea.vmem %s9805_s3, %s7597_s12  ;;  %s7961_s19 = scalar_lea.vmem %s9803_s1, %s6052_s16 }
  0x29   : > { %v7902_v1 = vld [vmem:[%s7899_s15 + $0x78] sm:$0xff]  ;;  %v7905_v2 = vld [vmem:[%s7899_s15 + $0x68] sm:$0xff]  ;;  %v7910_v3 = vld [vmem:[%s7899_s15 + $0x70] sm:$0xff]  ;;  %v7964_v36 = vsub.s32 1, %v7954_v35  ;;  %v2006_v37 = vsub.s32 3, %v7954_v35  ;;  %v7968_v38 = vsub.s32 0, %v7954_v35  ;;  %s8192_s22 = scalar_lea.vmem %s9804_s2, %s6052_s16 }
  0x2a   : > { %1908 = vperm.xlu0 %7665, %v7902_v1   ;;  %1898 = vperm.xlu1 %7666, %v7905_v2   ;;  %v7913_v4 = vld [vmem:[%s7899_s15 + $0x60] sm:$0xff]  ;;  %v7918_v5 = vld [vmem:[%s7899_s15 + $0x58] sm:$0xff]  ;;  %v343_v6 = vld [vmem:[%s7899_s15 + $0x50] sm:$0xff]  ;;  %v2002_v40 = vsub.s32 2, %v7954_v35  ;;  %v7975_v42 = vadd.s32 120, %v7954_v35  ;;  %v8000_v48 = vadd.s32 112, %v7954_v35 }
  0x2b   : > { %v342_v7 = vld [vmem:[%s7899_s15 + $0x48] sm:$0xff]  ;;  %v341_v8 = vld [vmem:[%s7899_s15 + $0x40] sm:$0xff]  ;;  %v340_v9 = vld [vmem:[%s7899_s15 + $0x38] sm:$0xff]  ;;  %v8020_v52 = vadd.s32 104, %v7954_v35  ;;  %v8037_v54 = vadd.s32 96, %v7954_v35  ;;  %v8054_v56 = vadd.s32 88, %v7954_v35 }
  0x2c   : > { %v339_v10 = vld [vmem:[%s7899_s15 + $0x30] sm:$0xff]  ;;  %v338_v11 = vld [vmem:[%s7899_s15 + $0x28] sm:$0xff]  ;;  %v337_v12 = vld [vmem:[%s7899_s15 + $0x20] sm:$0xff]  ;;  %vm2200_vm0 = vcmp.le.s32.totalorder %v7975_v42, %v7972_v41  ;;  %v8071_v58 = vadd.s32 80, %v7954_v35  ;;  %v8088_v60 = vadd.s32 72, %v7954_v35  ;;  %v8105_v62 = vadd.s32 64, %v7954_v35 }
  0x2d   : > { %v336_v13 = vld [vmem:[%s7899_s15 + $0x18] sm:$0xff]  ;;  %v335_v14 = vld [vmem:[%s7899_s15 + $0x10] sm:$0xff]  ;;  %v334_v15 = vld [vmem:[%s7899_s15 + $0x8] sm:$0xff]  ;;  %v8122_v0 = vadd.s32 56, %v7954_v35  ;;  %s276_s29 = scalar_select %p9808_p3, %s9714_s28, 1 }
  0x2e   : > { %1903 = vperm.xlu0 %7665, %v7910_v3   ;;  %1893 = vperm.xlu1 %7666, %v7913_v4   ;;  %v333_v16 = vld [vmem:[%s7899_s15] sm:$0xff]  ;;  %v364_v17 = vld [vmem:[%s7899_s15 + $0xf8] sm:$0xff]  ;;  %v363_v18 = vld [vmem:[%s7899_s15 + $0xf0] sm:$0xff]  ;;  %s5894_s11 = scalar_select %p9808_p3, 1.0, 0.0 }
  0x2f   : > { %v362_v19 = vld [vmem:[%s7899_s15 + $0xe8] sm:$0xff]  ;;  %v361_v20 = vld [vmem:[%s7899_s15 + $0xe0] sm:$0xff]  ;;  %v360_v21 = vld [vmem:[%s7899_s15 + $0xd8] sm:$0xff]  ;;  %s277_s6 = scvt.s32.f32 %s276_s29  ;;  %s7593_s12 = sshll.u32 %s7786_s25, 4 }
  0x30   : > { %v359_v22 = vld [vmem:[%s7899_s15 + $0xd0] sm:$0xff]  ;;  %v358_v23 = vld [vmem:[%s7899_s15 + $0xc8] sm:$0xff]  ;;  %v357_v24 = vld [vmem:[%s7899_s15 + $0xc0] sm:$0xff]  ;;  %s5926_s16 = scalar_lea.hbm %s9807_s5, %s7593_s12 }
  0x31   : > { %v356_v25 = vld [vmem:[%s7899_s15 + $0xb8] sm:$0xff]  ;;  %v355_v26 = vld [vmem:[%s7899_s15 + $0xb0] sm:$0xff]  ;;  %v354_v27 = vld [vmem:[%s7899_s15 + $0xa8] sm:$0xff] }
  0x32   : > { %1888 = vperm.xlu0 %7665, %v7918_v5   ;;  %1883 = vperm.xlu1 %7666, %v343_v6   ;;  %v353_v28 = vld [vmem:[%s7899_s15 + $0xa0] sm:$0xff]  ;;  %v352_v29 = vld [vmem:[%s7899_s15 + $0x98] sm:$0xff]  ;;  %v351_v30 = vld [vmem:[%s7899_s15 + $0x90] sm:$0xff] }
  0x33   : > { %v350_v31 = vld [vmem:[%s7899_s15 + $0x88] sm:$0xff]  ;;  %v349_v32 = vld [vmem:[%s7899_s15 + $0x80] sm:$0xff] }
  0x34   : > { %v279_v39 = vld [vmem:[%s7961_s19] sm:$0xf] }
  0x35   : > { %v7978_v43 = vrot.slane %v279_v39, %v7964_v36  ;;  %v7982_v44 = vrot.slane %v279_v39, %v2006_v37  ;;  %v7985_v45 = vrot.slane %v279_v39, %v7968_v38  ;;  %v7989_v46 = vrot.slane %v279_v39, %v2002_v40 }
  0x36   : > { %1878 = vperm.xlu0 %7665, %v342_v7   ;;  %1873 = vperm.xlu1 %7666, %v341_v8   ;;  %v8438_v39 = vadd.s32 216, %v7954_v35 }
  0x3a   : > { %1868 = vperm.xlu0 %7665, %v340_v9   ;;  %1863 = vperm.xlu1 %7666, %v339_v10  }
  0x3e   : > { %1858 = vperm.xlu0 %7665, %v338_v11   ;;  %1853 = vperm.xlu1 %7666, %v337_v12  }
  0x42   : > { %1848 = vperm.xlu0 %7665, %v336_v13   ;;  %1843 = vperm.xlu1 %7666, %v335_v14  }
  0x46   : > { %1838 = vperm.xlu0 %7665, %v334_v15   ;;  %1833 = vperm.xlu1 %7666, %v333_v16  }
  0x4a   : > { %1988 = vperm.xlu0 %7665, %v364_v17   ;;  %1983 = vperm.xlu1 %7666, %v363_v18  }
  0x4e   : > { %1978 = vperm.xlu0 %7665, %v362_v19   ;;  %1973 = vperm.xlu1 %7666, %v361_v20  }
  0x52   : > { %1968 = vperm.xlu0 %7665, %v360_v21   ;;  %1963 = vperm.xlu1 %7666, %v359_v22  }
  0x56   : > { %1958 = vperm.xlu0 %7665, %v358_v23   ;;  %1953 = vperm.xlu1 %7666, %v357_v24  }
  0x5a   : > { %1948 = vperm.xlu0 %7665, %v356_v25   ;;  %1943 = vperm.xlu1 %7666, %v355_v26  }
  0x5e   : > { %1938 = vperm.xlu0 %7665, %v354_v27   ;;  %1933 = vperm.xlu1 %7666, %v353_v28  }
  0x62   : > { %1928 = vperm.xlu0 %7665, %v352_v29   ;;  %1923 = vperm.xlu1 %7666, %v351_v30  }
  0x66   : > { %1918 = vperm.xlu0 %7665, %v350_v31   ;;  %1913 = vperm.xlu1 %7666, %v349_v32  }
  0x6a   : > { %7667 = vset.pattern.permute.xlu0 %v7798_v33  ;;  %7668 = vset.pattern.permute.xlu1 %v7798_v33  ;;  %v8413_v33 = vadd.s32 224, %v7954_v35 }
  0x6b   : > { %4635 = vperm.xlu0 %7667, %v7902_v1   ;;  %4630 = vperm.xlu1 %7668, %v7910_v3  }
  0x6f   : > { %4620 = vperm.xlu0 %7667, %v7913_v4   ;;  %4625 = vperm.xlu1 %7668, %v7905_v2   ;;  %v8139_v2 = vadd.s32 48, %v7954_v35 }
  0x73   : > { %4610 = vperm.xlu0 %7667, %v343_v6   ;;  %4615 = vperm.xlu1 %7668, %v7918_v5   ;;  %v8158_v5 = vadd.s32 40, %v7954_v35  ;;  %v8175_v6 = vadd.s32 32, %v7954_v35 }
  0x77   : > { %4600 = vperm.xlu0 %7667, %v341_v8   ;;  %4605 = vperm.xlu1 %7668, %v342_v7   ;;  %v7800_v8 = vmov 0.0  }
  0x78   : > { %5884 = vst [vmem:[#allocation3] sm:$0x1] %v7800_v8 }
  0x7b   : > { %4590 = vperm.xlu0 %7667, %v339_v10   ;;  %4595 = vperm.xlu1 %7668, %v340_v9   ;;  %v8209_v10 = vadd.s32 24, %v7954_v35 }
  0x7f   : > { %4580 = vperm.xlu0 %7667, %v337_v12   ;;  %4585 = vperm.xlu1 %7668, %v338_v11   ;;  %v365_v11 = vld [vmem:[%s8192_s22] sm:$0x3] }
  0x83   : > { %4570 = vperm.xlu0 %7667, %v335_v14   ;;  %4575 = vperm.xlu1 %7668, %v336_v13   ;;  %v375_v13 = vrot.slane %v365_v11, %v7964_v36  ;;  %v371_v14 = vrot.slane %v365_v11, %v7968_v38 }
  0x87   : > { %4560 = vperm.xlu0 %7667, %v333_v16   ;;  %4565 = vperm.xlu1 %7668, %v334_v15  }
  0x8b   : > { %4710 = vperm.xlu0 %7667, %v363_v18   ;;  %4715 = vperm.xlu1 %7668, %v364_v17   ;;  %v8246_v17 = vadd.s32 16, %v7954_v35 }
  0x8f   : > { %4700 = vperm.xlu0 %7667, %v361_v20   ;;  %4705 = vperm.xlu1 %7668, %v362_v19  }
  0x93   : > { %4690 = vperm.xlu0 %7667, %v359_v22   ;;  %4695 = vperm.xlu1 %7668, %v360_v21   ;;  %v8290_v22 = vadd.s32 8, %v7954_v35 }
  0x97   : > { %4680 = vperm.xlu0 %7667, %v357_v24   ;;  %4685 = vperm.xlu1 %7668, %v358_v23  }
  0x9b   : > { %4670 = vperm.xlu0 %7667, %v355_v26   ;;  %4675 = vperm.xlu1 %7668, %v356_v25   ;;  %v8336_v25 = vadd.s32 128, %v7972_v41  ;;  %v8339_v26 = vadd.s32 248, %v7954_v35 }
  0x9f   : > { %4660 = vperm.xlu0 %7667, %v353_v28   ;;  %4665 = vperm.xlu1 %7668, %v354_v27   ;;  %v8362_v28 = vadd.s32 240, %v7954_v35 }
  0xa3   : > { %4650 = vperm.xlu0 %7667, %v351_v30   ;;  %4655 = vperm.xlu1 %7668, %v352_v29   ;;  %v8383_v30 = vadd.s32 232, %v7954_v35 }
  0xa5   : > { %v1909_v47 = vpop.permute.xlu0 %1908  ;;  %v1899_v51 = vpop.permute.xlu1 %1898 }
  0xa6   : > { %vm2073_vm1 = vcmp.eq.f32.partialorder %v1909_v47, %v7978_v43  ;;  %vm2457_vm2 = vcmp.gt.f32.partialorder %v1909_v47, %v7978_v43  ;;  %vm2075_vm3 = vcmp.eq.f32.partialorder %v1909_v47, %v7982_v44  ;;  %vm2459_vm4 = vcmp.gt.f32.partialorder %v1909_v47, %v7982_v44 }
  0xa7   : > { %4640 = vperm.xlu0 %7667, %v349_v32   ;;  %vm2585_vm5 = vmor %vm2457_vm2, %vm2073_vm1  ;;  %vm2072_vm6 = vcmp.eq.f32.partialorder %v1909_v47, %v7985_v45  ;;  %vm2456_vm7 = vcmp.gt.f32.partialorder %v1909_v47, %v7985_v45  ;;  %4645 = vperm.xlu1 %7668, %v350_v31   ;;  %vm2074_vm9 = vcmp.eq.f32.partialorder %v1909_v47, %v7989_v46 }
  0xa8   : > { %6696 = vmatprep.subr.msk.mxu0 %vm2585_vm5, %v7799_v49  ;;  %vm2587_vm8 = vmor %vm2459_vm4, %vm2075_vm3  ;;  %vm2458_vm10 = vcmp.gt.f32.partialorder %v1909_v47, %v7989_v46  ;;  %vm2196_vm4 = vcmp.le.s32.totalorder %v8000_v48, %v7972_v41 }
  0xa9   : > { %6760 = vmatprep.subr.msk.mxu1 %vm2587_vm8, %v7799_v49  ;;  %v1904_v50 = vpop.permute.xlu0 %1903  ;;  %vm2328_vm11 = vmand %vm2072_vm6, %vm2200_vm0  ;;  %v1894_v53 = vpop.permute.xlu1 %1893 }
  0xaa   : > { %vm2584_vm12 = vmor %vm2456_vm7, %vm2328_vm11  ;;  %vm2069_vm13 = vcmp.eq.f32.partialorder %v1904_v50, %v7978_v43  ;;  %vm2453_vm14 = vcmp.gt.f32.partialorder %v1904_v50, %v7978_v43  ;;  %vm2071_vm15 = vcmp.eq.f32.partialorder %v1904_v50, %v7982_v44  ;;  %vm2455_vm1 = vcmp.gt.f32.partialorder %v1904_v50, %v7982_v44 }
  0xab   : > { %6697 = vmatpush1.msk.msra.mxu0 %vm2584_vm12, %v7799_v49  ;;  %vm2586_vm2 = vmor %vm2458_vm10, %vm2074_vm9  ;;  %vm2068_vm3 = vcmp.eq.f32.partialorder %v1904_v50, %v7985_v45  ;;  %vm2452_vm5 = vcmp.gt.f32.partialorder %v1904_v50, %v7985_v45  ;;  %vm2070_vm7 = vcmp.eq.f32.partialorder %v1904_v50, %v7989_v46  ;;  %vm2454_vm8 = vcmp.gt.f32.partialorder %v1904_v50, %v7989_v46 }
  0xac   : > { %6761 = vmatpush1.msk.msra.mxu1 %vm2586_vm2, %v7799_v49  ;;  %vm2581_vm0 = vmor %vm2453_vm14, %vm2069_vm13  ;;  %vm2065_vm10 = vcmp.eq.f32.partialorder %v1899_v51, %v7978_v43  ;;  %vm2449_vm11 = vcmp.gt.f32.partialorder %v1899_v51, %v7978_v43  ;;  %vm2067_vm13 = vcmp.eq.f32.partialorder %v1899_v51, %v7982_v44  ;;  %vm2451_vm14 = vcmp.gt.f32.partialorder %v1899_v51, %v7982_v44 }
  0xad   : > { %6698 = vmatprep.subr.msk.mxu0 %vm2581_vm0, %v7799_v49  ;;  %vm2583_vm6 = vmor %vm2455_vm1, %vm2071_vm15  ;;  %vm2064_vm1 = vcmp.eq.f32.partialorder %v1899_v51, %v7985_v45  ;;  %vm2192_vm2 = vcmp.le.s32.totalorder %v8020_v52, %v7972_v41  ;;  %v1889_v55 = vpop.permute.xlu0 %1888  ;;  %v1884_v57 = vpop.permute.xlu1 %1883  ;;  %v8463_v50 = vadd.s32 208, %v7954_v35 }
  0xae   : > { %6762 = vmatprep.subr.msk.mxu1 %vm2583_vm6, %v7799_v49  ;;  %vm2324_vm9 = vmand %vm2068_vm3, %vm2196_vm4  ;;  %vm2448_vm4 = vcmp.gt.f32.partialorder %v1899_v51, %v7985_v45  ;;  %vm2450_vm6 = vcmp.gt.f32.partialorder %v1899_v51, %v7989_v46 }
  0xaf   : > { %vm2580_vm12 = vmor %vm2452_vm5, %vm2324_vm9  ;;  %vm2066_vm5 = vcmp.eq.f32.partialorder %v1899_v51, %v7989_v46  ;;  %vm2445_vm9 = vcmp.gt.f32.partialorder %v1894_v53, %v7978_v43 }
  0xb0   : > { %6699 = vmatpush1.msk.msra.mxu0 %vm2580_vm12, %v7799_v49  ;;  %vm2582_vm15 = vmor %vm2454_vm8, %vm2070_vm7  ;;  %vm2061_vm8 = vcmp.eq.f32.partialorder %v1894_v53, %v7978_v43  ;;  %vm2447_vm12 = vcmp.gt.f32.partialorder %v1894_v53, %v7982_v44 }
  0xb1   : > { %6763 = vmatpush1.msk.msra.mxu1 %vm2582_vm15, %v7799_v49  ;;  %vm2577_vm3 = vmor %vm2449_vm11, %vm2065_vm10  ;;  %vm2063_vm11 = vcmp.eq.f32.partialorder %v1894_v53, %v7982_v44  ;;  %vm2188_vm15 = vcmp.le.s32.totalorder %v8037_v54, %v7972_v41  ;;  %v1879_v59 = vpop.permute.xlu0 %1878  ;;  %v1874_v61 = vpop.permute.xlu1 %1873 }
  0xb2   : > { %6700 = vmatprep.subr.msk.mxu0 %vm2577_vm3, %v7799_v49  ;;  %vm2579_vm0 = vmor %vm2451_vm14, %vm2067_vm13  ;;  %vm2060_vm14 = vcmp.eq.f32.partialorder %v1894_v53, %v7985_v45 }
  0xb3   : > { %6764 = vmatprep.subr.msk.mxu1 %vm2579_vm0, %v7799_v49  ;;  %vm2320_vm7 = vmand %vm2064_vm1, %vm2192_vm2  ;;  %vm2444_vm2 = vcmp.gt.f32.partialorder %v1894_v53, %v7985_v45  ;;  %vm2446_vm0 = vcmp.gt.f32.partialorder %v1894_v53, %v7989_v46 }
  0xb4   : > { %vm2576_vm10 = vmor %vm2448_vm4, %vm2320_vm7  ;;  %vm2062_vm4 = vcmp.eq.f32.partialorder %v1894_v53, %v7989_v46  ;;  %vm2441_vm7 = vcmp.gt.f32.partialorder %v1889_v55, %v7978_v43 }
  0xb5   : > { %6701 = vmatpush1.msk.msra.mxu0 %vm2576_vm10, %v7799_v49  ;;  %vm2578_vm13 = vmor %vm2450_vm6, %vm2066_vm5  ;;  %vm2057_vm6 = vcmp.eq.f32.partialorder %v1889_v55, %v7978_v43  ;;  %vm2443_vm10 = vcmp.gt.f32.partialorder %v1889_v55, %v7982_v44  ;;  %v1869_v63 = vpop.permute.xlu0 %1868  ;;  %v1864_v1 = vpop.permute.xlu1 %1863 }
  0xb6   : > { %6765 = vmatpush1.msk.msra.mxu1 %vm2578_vm13, %v7799_v49  ;;  %vm2573_vm1 = vmor %vm2445_vm9, %vm2061_vm8  ;;  %vm2059_vm9 = vcmp.eq.f32.partialorder %v1889_v55, %v7982_v44  ;;  %vm2184_vm13 = vcmp.le.s32.totalorder %v8054_v56, %v7972_v41 }
  0xb7   : > { %6702 = vmatprep.subr.msk.mxu0 %vm2573_vm1, %v7799_v49  ;;  %vm2575_vm3 = vmor %vm2447_vm12, %vm2063_vm11  ;;  %vm2056_vm12 = vcmp.eq.f32.partialorder %v1889_v55, %v7985_v45 }
  0xb8   : > { %6766 = vmatprep.subr.msk.mxu1 %vm2575_vm3, %v7799_v49  ;;  %vm2316_vm5 = vmand %vm2060_vm14, %vm2188_vm15  ;;  %vm2440_vm15 = vcmp.gt.f32.partialorder %v1889_v55, %v7985_v45  ;;  %vm2442_vm3 = vcmp.gt.f32.partialorder %v1889_v55, %v7989_v46 }
  0xb9   : > { %vm2572_vm8 = vmor %vm2444_vm2, %vm2316_vm5  ;;  %vm2058_vm2 = vcmp.eq.f32.partialorder %v1889_v55, %v7989_v46  ;;  %vm2437_vm5 = vcmp.gt.f32.partialorder %v1884_v57, %v7978_v43  ;;  %v1859_v3 = vpop.permute.xlu0 %1858  ;;  %v8153_v4 = vpop.permute.xlu1 %1853  ;;  %v8493_v55 = vadd.s32 200, %v7954_v35 }
  0xba   : > { %6703 = vmatpush1.msk.msra.mxu0 %vm2572_vm8, %v7799_v49  ;;  %vm2574_vm11 = vmor %vm2446_vm0, %vm2062_vm4  ;;  %vm2053_vm0 = vcmp.eq.f32.partialorder %v1884_v57, %v7978_v43  ;;  %vm2439_vm8 = vcmp.gt.f32.partialorder %v1884_v57, %v7982_v44 }
  0xbb   : > { %6767 = vmatpush1.msk.msra.mxu1 %vm2574_vm11, %v7799_v49  ;;  %vm2569_vm14 = vmor %vm2441_vm7, %vm2057_vm6  ;;  %vm2055_vm7 = vcmp.eq.f32.partialorder %v1884_v57, %v7982_v44  ;;  %vm2180_vm11 = vcmp.le.s32.totalorder %v8071_v58, %v7972_v41 }
  0xbc   : > { %6704 = vmatprep.subr.msk.mxu0 %vm2569_vm14, %v7799_v49  ;;  %vm2571_vm1 = vmor %vm2443_vm10, %vm2059_vm9  ;;  %vm2052_vm10 = vcmp.eq.f32.partialorder %v1884_v57, %v7985_v45 }
  0xbd   : > { %6768 = vmatprep.subr.msk.mxu1 %vm2571_vm1, %v7799_v49  ;;  %vm2312_vm4 = vmand %vm2056_vm12, %vm2184_vm13  ;;  %vm2436_vm13 = vcmp.gt.f32.partialorder %v1884_v57, %v7985_v45  ;;  %vm2438_vm1 = vcmp.gt.f32.partialorder %v1884_v57, %v7989_v46  ;;  %v8177_v7 = vpop.permute.xlu1 %1843  ;;  %v1849_v9 = vpop.permute.xlu0 %1848 }
  0xbe   : > { %vm2568_vm6 = vmor %vm2440_vm15, %vm2312_vm4  ;;  %vm2054_vm15 = vcmp.eq.f32.partialorder %v1884_v57, %v7989_v46  ;;  %vm2433_vm4 = vcmp.gt.f32.partialorder %v1879_v59, %v7978_v43 }
  0xbf   : > { %6705 = vmatpush1.msk.msra.mxu0 %vm2568_vm6, %v7799_v49  ;;  %vm2570_vm9 = vmor %vm2442_vm3, %vm2058_vm2  ;;  %vm2049_vm3 = vcmp.eq.f32.partialorder %v1879_v59, %v7978_v43  ;;  %vm2435_vm6 = vcmp.gt.f32.partialorder %v1879_v59, %v7982_v44 }
  0xc0   : > { %6769 = vmatpush1.msk.msra.mxu1 %vm2570_vm9, %v7799_v49  ;;  %vm2565_vm12 = vmor %vm2437_vm5, %vm2053_vm0  ;;  %vm2051_vm5 = vcmp.eq.f32.partialorder %v1879_v59, %v7982_v44  ;;  %vm2176_vm9 = vcmp.le.s32.totalorder %v8088_v60, %v7972_v41 }
  0xc1   : > { %6706 = vmatprep.subr.msk.mxu0 %vm2565_vm12, %v7799_v49  ;;  %vm2567_vm14 = vmor %vm2439_vm8, %vm2055_vm7  ;;  %vm2048_vm8 = vcmp.eq.f32.partialorder %v1879_v59, %v7985_v45  ;;  %v8219_v12 = vpop.permute.xlu1 %1833  ;;  %v8227_v15 = vpop.permute.xlu0 %1838 }
  0xc2   : > { %6770 = vmatprep.subr.msk.mxu1 %vm2567_vm14, %v7799_v49  ;;  %vm2308_vm2 = vmand %vm2052_vm10, %vm2180_vm11  ;;  %vm2432_vm11 = vcmp.gt.f32.partialorder %v1879_v59, %v7985_v45  ;;  %vm2434_vm14 = vcmp.gt.f32.partialorder %v1879_v59, %v7989_v46 }
  0xc3   : > { %vm2564_vm0 = vmor %vm2436_vm13, %vm2308_vm2  ;;  %vm2050_vm13 = vcmp.eq.f32.partialorder %v1879_v59, %v7989_v46  ;;  %vm2429_vm2 = vcmp.gt.f32.partialorder %v1874_v61, %v7978_v43  ;;  %v8518_v59 = vadd.s32 192, %v7954_v35 }
  0xc4   : > { %6707 = vmatpush1.msk.msra.mxu0 %vm2564_vm0, %v7799_v49  ;;  %vm2566_vm7 = vmor %vm2438_vm1, %vm2054_vm15  ;;  %vm2045_vm1 = vcmp.eq.f32.partialorder %v1874_v61, %v7978_v43  ;;  %vm2431_vm0 = vcmp.gt.f32.partialorder %v1874_v61, %v7982_v44 }
  0xc5   : > { %6771 = vmatpush1.msk.msra.mxu1 %vm2566_vm7, %v7799_v49  ;;  %vm2561_vm10 = vmor %vm2433_vm4, %vm2049_vm3  ;;  %vm2047_vm4 = vcmp.eq.f32.partialorder %v1874_v61, %v7982_v44  ;;  %vm2172_vm7 = vcmp.le.s32.totalorder %v8105_v62, %v7972_v41  ;;  %v8272_v20 = vpop.permute.xlu1 %1983  ;;  %v8285_v21 = vpop.permute.xlu0 %1988 }
  0xc6   : > { %6708 = vmatprep.subr.msk.mxu0 %vm2561_vm10, %v7799_v49  ;;  %vm2563_vm12 = vmor %vm2435_vm6, %vm2051_vm5  ;;  %vm2044_vm6 = vcmp.eq.f32.partialorder %v1874_v61, %v7985_v45 }
  0xc7   : > { %6772 = vmatprep.subr.msk.mxu1 %vm2563_vm12, %v7799_v49  ;;  %vm2304_vm15 = vmand %vm2048_vm8, %vm2176_vm9  ;;  %vm2428_vm9 = vcmp.gt.f32.partialorder %v1874_v61, %v7985_v45  ;;  %vm2430_vm12 = vcmp.gt.f32.partialorder %v1874_v61, %v7989_v46 }
  0xc8   : > { %vm2560_vm3 = vmor %vm2432_vm11, %vm2304_vm15  ;;  %vm2046_vm11 = vcmp.eq.f32.partialorder %v1874_v61, %v7989_v46  ;;  %vm2425_vm15 = vcmp.gt.f32.partialorder %v1869_v63, %v7978_v43 }
  0xc9   : > { %6709 = vmatpush1.msk.msra.mxu0 %vm2560_vm3, %v7799_v49  ;;  %vm2562_vm5 = vmor %vm2434_vm14, %vm2050_vm13  ;;  %vm2041_vm14 = vcmp.eq.f32.partialorder %v1869_v63, %v7978_v43  ;;  %vm2427_vm3 = vcmp.gt.f32.partialorder %v1869_v63, %v7982_v44  ;;  %v8314_v23 = vpop.permute.xlu1 %1973  ;;  %v8324_v24 = vpop.permute.xlu0 %1978 }
  0xca   : > { %6773 = vmatpush1.msk.msra.mxu1 %vm2562_vm5, %v7799_v49  ;;  %vm2557_vm8 = vmor %vm2429_vm2, %vm2045_vm1  ;;  %vm2043_vm2 = vcmp.eq.f32.partialorder %v1869_v63, %v7982_v44  ;;  %vm2168_vm5 = vcmp.le.s32.totalorder %v8122_v0, %v7972_v41 }
  0xcb   : > { %6710 = vmatprep.subr.msk.mxu0 %vm2557_vm8, %v7799_v49  ;;  %vm2559_vm10 = vmor %vm2431_vm0, %vm2047_vm4  ;;  %vm2040_vm0 = vcmp.eq.f32.partialorder %v1869_v63, %v7985_v45 }
  0xcc   : > { %6774 = vmatprep.subr.msk.mxu1 %vm2559_vm10, %v7799_v49  ;;  %vm2300_vm13 = vmand %vm2044_vm6, %vm2172_vm7  ;;  %vm2424_vm7 = vcmp.gt.f32.partialorder %v1869_v63, %v7985_v45  ;;  %vm2426_vm10 = vcmp.gt.f32.partialorder %v1869_v63, %v7989_v46 }
  0xcd   : > { %vm2556_vm1 = vmor %vm2428_vm9, %vm2300_vm13  ;;  %vm2042_vm9 = vcmp.eq.f32.partialorder %v1869_v63, %v7989_v46  ;;  %vm2421_vm13 = vcmp.gt.f32.partialorder %v1864_v1, %v7978_v43  ;;  %v8349_v27 = vpop.permute.xlu1 %1963  ;;  %v8364_v29 = vpop.permute.xlu0 %1968  ;;  %v3094_v63 = vld [vmem:[%s8192_s22 + $0x2] sm:$0x3] }
  0xce   : > { %6711 = vmatpush1.msk.msra.mxu0 %vm2556_vm1, %v7799_v49  ;;  %vm2558_vm4 = vmor %vm2430_vm12, %vm2046_vm11  ;;  %vm2037_vm12 = vcmp.eq.f32.partialorder %v1864_v1, %v7978_v43  ;;  %vm2423_vm1 = vcmp.gt.f32.partialorder %v1864_v1, %v7982_v44 }
  0xcf   : > { %6775 = vmatpush1.msk.msra.mxu1 %vm2558_vm4, %v7799_v49  ;;  %vm2553_vm6 = vmor %vm2425_vm15, %vm2041_vm14  ;;  %vm2039_vm15 = vcmp.eq.f32.partialorder %v1864_v1, %v7982_v44  ;;  %vm2164_vm4 = vcmp.le.s32.totalorder %v8139_v2, %v7972_v41 }
  0xd0   : > { %6712 = vmatprep.subr.msk.mxu0 %vm2553_vm6, %v7799_v49  ;;  %vm2555_vm8 = vmor %vm2427_vm3, %vm2043_vm2  ;;  %vm2036_vm3 = vcmp.eq.f32.partialorder %v1864_v1, %v7985_v45 }
  0xd1   : > { %6776 = vmatprep.subr.msk.mxu1 %vm2555_vm8, %v7799_v49  ;;  %vm2296_vm11 = vmand %vm2040_vm0, %vm2168_vm5  ;;  %vm2420_vm5 = vcmp.gt.f32.partialorder %v1864_v1, %v7985_v45  ;;  %vm2422_vm8 = vcmp.gt.f32.partialorder %v1864_v1, %v7989_v46  ;;  %v8385_v31 = vpop.permute.xlu1 %1953  ;;  %v8398_v32 = vpop.permute.xlu0 %1958 }
  0xd2   : > { %vm2552_vm14 = vmor %vm2424_vm7, %vm2296_vm11  ;;  %vm2038_vm7 = vcmp.eq.f32.partialorder %v1864_v1, %v7989_v46  ;;  %vm2417_vm11 = vcmp.gt.f32.partialorder %v1859_v3, %v7978_v43  ;;  %v8544_v1 = vadd.s32 184, %v7954_v35 }
  0xd3   : > { %6713 = vmatpush1.msk.msra.mxu0 %vm2552_vm14, %v7799_v49  ;;  %vm2554_vm2 = vmor %vm2426_vm10, %vm2042_vm9  ;;  %vm2033_vm10 = vcmp.eq.f32.partialorder %v1859_v3, %v7978_v43  ;;  %vm2419_vm14 = vcmp.gt.f32.partialorder %v1859_v3, %v7982_v44 }
  0xd4   : > { %6777 = vmatpush1.msk.msra.mxu1 %vm2554_vm2, %v7799_v49  ;;  %vm2549_vm0 = vmor %vm2421_vm13, %vm2037_vm12  ;;  %vm2035_vm13 = vcmp.eq.f32.partialorder %v1859_v3, %v7982_v44 }
  0xd5   : > { %6714 = vmatprep.subr.msk.mxu0 %vm2549_vm0, %v7799_v49  ;;  %vm2551_vm6 = vmor %vm2423_vm1, %vm2039_vm15  ;;  %vm2032_vm15 = vcmp.eq.f32.partialorder %v1859_v3, %v7985_v45  ;;  %vm2160_vm1 = vcmp.le.s32.totalorder %v8158_v5, %v7972_v41  ;;  %v8426_v34 = vpop.permute.xlu1 %1943  ;;  %v8440_v47 = vpop.permute.xlu0 %1948 }
  0xd6   : > { %6778 = vmatprep.subr.msk.mxu1 %vm2551_vm6, %v7799_v49  ;;  %vm2292_vm9 = vmand %vm2036_vm3, %vm2164_vm4  ;;  %vm2416_vm4 = vcmp.gt.f32.partialorder %v1859_v3, %v7985_v45  ;;  %vm2418_vm6 = vcmp.gt.f32.partialorder %v1859_v3, %v7989_v46 }
  0xd7   : > { %vm2548_vm12 = vmor %vm2420_vm5, %vm2292_vm9  ;;  %vm2034_vm5 = vcmp.eq.f32.partialorder %v1859_v3, %v7989_v46  ;;  %vm2413_vm9 = vcmp.gt.f32.partialorder %v8153_v4, %v7978_v43 }
  0xd8   : > { %6715 = vmatpush1.msk.msra.mxu0 %vm2548_vm12, %v7799_v49  ;;  %vm2550_vm2 = vmor %vm2422_vm8, %vm2038_vm7  ;;  %vm2029_vm8 = vcmp.eq.f32.partialorder %v8153_v4, %v7978_v43  ;;  %vm2415_vm12 = vcmp.gt.f32.partialorder %v8153_v4, %v7982_v44 }
  0xd9   : > { %6779 = vmatpush1.msk.msra.mxu1 %vm2550_vm2, %v7799_v49  ;;  %vm2545_vm3 = vmor %vm2417_vm11, %vm2033_vm10  ;;  %vm2031_vm11 = vcmp.eq.f32.partialorder %v8153_v4, %v7982_v44  ;;  %vm2156_vm2 = vcmp.le.s32.totalorder %v8175_v6, %v7972_v41  ;;  %v8465_v51 = vpop.permute.xlu1 %1933  ;;  %v8478_v53 = vpop.permute.xlu0 %1938 }
  0xda   : > { %6716 = vmatprep.subr.msk.mxu0 %vm2545_vm3, %v7799_v49  ;;  %vm2547_vm0 = vmor %vm2419_vm14, %vm2035_vm13  ;;  %vm2028_vm14 = vcmp.eq.f32.partialorder %v8153_v4, %v7985_v45 }
  0xdb   : > { %6780 = vmatprep.subr.msk.mxu1 %vm2547_vm0, %v7799_v49  ;;  %vm2288_vm7 = vmand %vm2032_vm15, %vm2160_vm1  ;;  %vm2412_vm1 = vcmp.gt.f32.partialorder %v8153_v4, %v7985_v45  ;;  %vm2414_vm0 = vcmp.gt.f32.partialorder %v8153_v4, %v7989_v46 }
  0xdc   : > { %vm2544_vm10 = vmor %vm2416_vm4, %vm2288_vm7  ;;  %vm2030_vm4 = vcmp.eq.f32.partialorder %v8153_v4, %v7989_v46  ;;  %vm2025_vm7 = vcmp.eq.f32.partialorder %v1849_v9, %v7978_v43 }
  0xdd   : > { %6717 = vmatpush1.msk.msra.mxu0 %vm2544_vm10, %v7799_v49  ;;  %vm2546_vm13 = vmor %vm2418_vm6, %vm2034_vm5  ;;  %vm286_vm5 = vcmp.eq.s32.totalorder %v7954_v35, 1  ;;  %vm2027_vm10 = vcmp.eq.f32.partialorder %v1849_v9, %v7982_v44  ;;  %v8506_v57 = vpop.permute.xlu1 %1923  ;;  %v8520_v61 = vpop.permute.xlu0 %1928 }
  0xde   : > { %6781 = vmatpush1.msk.msra.mxu1 %vm2546_vm13, %v7799_v49  ;;  %vm2541_vm15 = vmor %vm2413_vm9, %vm2029_vm8  ;;  %vm2409_vm8 = vcmp.gt.f32.partialorder %v1849_v9, %v7978_v43  ;;  %vm2024_vm13 = vcmp.eq.f32.partialorder %v1849_v9, %v7985_v45  ;;  %v8238_v16 = vsel %vm286_vm5, 1.0, %v7800_v8  ;;  %v3099_v8 = vrot.slane %v3094_v63, %v7968_v38 }
  0xdf   : > { %6718 = vmatprep.subr.msk.mxu0 %vm2541_vm15, %v7799_v49  ;;  %vm2543_vm3 = vmor %vm2415_vm12, %vm2031_vm11  ;;  %vm2411_vm11 = vcmp.gt.f32.partialorder %v1849_v9, %v7982_v44 }
  0xe0   : > { %6782 = vmatprep.subr.msk.mxu1 %vm2543_vm3, %v7799_v49  ;;  %vm2284_vm6 = vmand %vm2028_vm14, %vm2156_vm2  ;;  %vm2152_vm14 = vcmp.le.s32.totalorder %v8209_v10, %v7972_v41  ;;  %vm366_vm2 = vcmp.eq.s32.totalorder %v7954_v35, 0 }
  0xe1   : > { %vm2540_vm9 = vmor %vm2412_vm1, %vm2284_vm6  ;;  %vm2408_vm1 = vcmp.gt.f32.partialorder %v1849_v9, %v7985_v45  ;;  %vm2021_vm6 = vcmp.eq.f32.partialorder %v8177_v7, %v7978_v43  ;;  %v379_v18 = vsel %vm366_vm2, %v375_v13, %v8238_v16  ;;  %v8266_v19 = vsel %vm366_vm2, %v371_v14, %v8238_v16  ;;  %v8546_v3 = vpop.permute.xlu1 %1913  ;;  %v8562_v4 = vpop.permute.xlu0 %1918 }
  0xe2   : > { %6719 = vmatpush1.msk.msra.mxu0 %vm2540_vm9, %v7799_v49  ;;  %vm2542_vm12 = vmor %vm2414_vm0, %vm2030_vm4  ;;  %vm2026_vm4 = vcmp.eq.f32.partialorder %v1849_v9, %v7989_v46  ;;  %vm2410_vm0 = vcmp.gt.f32.partialorder %v1849_v9, %v7989_v46  ;;  %vm2023_vm9 = vcmp.eq.f32.partialorder %v8177_v7, %v7982_v44  ;;  %2976 = vmatprep.mubr.f32.mxu0 %v379_v18  ;;  %v8582_v9 = vadd.s32 176, %v7954_v35 }
  0xe3   : > { %6783 = vmatpush1.msk.msra.mxu1 %vm2542_vm12, %v7799_v49  ;;  %vm2537_vm15 = vmor %vm2409_vm8, %vm2025_vm7  ;;  %vm2405_vm7 = vcmp.gt.f32.partialorder %v8177_v7, %v7978_v43  ;;  %3047 = vmatprep.mubr.f32.mxu1 %v379_v18  ;;  %vm2020_vm12 = vcmp.eq.f32.partialorder %v8177_v7, %v7985_v45  ;;  %v8608_v13 = vsel %vm366_vm2, %v3099_v8, %v8238_v16  ;;  %v8626_v14 = vadd.s32 168, %v7954_v35 }
  0xe4   : > { %6720 = vmatprep.subr.msk.mxu0 %vm2537_vm15, %v7799_v49  ;;  %vm2539_vm3 = vmor %vm2411_vm11, %vm2027_vm10  ;;  %vm2407_vm10 = vcmp.gt.f32.partialorder %v8177_v7, %v7982_v44  ;;  %vm2404_vm15 = vcmp.gt.f32.partialorder %v8177_v7, %v7985_v45  ;;  %v4874_v8 = vadd.s32 256, %v8122_v0  ;;  %v4873_v0 = vadd.s32 256, %v8139_v2 }
  0xe5   : > { %6784 = vmatprep.subr.msk.mxu1 %vm2539_vm3, %v7799_v49  ;;  %vm2280_vm5 = vmand %vm2024_vm13, %vm2152_vm14  ;;  %vm2148_vm13 = vcmp.le.s32.totalorder %v8246_v17, %v7972_v41  ;;  %vm2022_vm3 = vcmp.eq.f32.partialorder %v8177_v7, %v7989_v46 }
  0xe6   : > { %vm2536_vm8 = vmor %vm2408_vm1, %vm2280_vm5  ;;  %vm2017_vm5 = vcmp.eq.f32.partialorder %v8227_v15, %v7978_v43 }
  0xe7   : > { %6721 = vmatpush1.msk.msra.mxu0 %vm2536_vm8, %v7799_v49  ;;  %vm2538_vm11 = vmor %vm2410_vm0, %vm2026_vm4  ;;  %vm2406_vm4 = vcmp.gt.f32.partialorder %v8177_v7, %v7989_v46  ;;  %vm2019_vm8 = vcmp.eq.f32.partialorder %v8227_v15, %v7982_v44  ;;  %v3103_v7 = vrot.slane %v3094_v63, %v7964_v36  ;;  %v4878_v63 = vadd.s32 256, %v8054_v56 }
  0xe8   : > { %6785 = vmatpush1.msk.msra.mxu1 %vm2538_vm11, %v7799_v49  ;;  %vm2533_vm14 = vmor %vm2405_vm7, %vm2021_vm6  ;;  %vm2401_vm6 = vcmp.gt.f32.partialorder %v8227_v15, %v7978_v43  ;;  %vm2016_vm11 = vcmp.eq.f32.partialorder %v8227_v15, %v7985_v45  ;;  %v4877_v56 = vadd.s32 256, %v8071_v58 }
  0xe9   : > { %6722 = vmatprep.subr.msk.mxu0 %vm2533_vm14, %v7799_v49  ;;  %vm2535_vm1 = vmor %vm2407_vm10, %vm2023_vm9  ;;  %vm2403_vm9 = vcmp.gt.f32.partialorder %v8227_v15, %v7982_v44  ;;  %vm2400_vm14 = vcmp.gt.f32.partialorder %v8227_v15, %v7985_v45  ;;  %v8595_v11 = vsel %vm366_vm2, %v3103_v7, %v8238_v16  ;;  %vm2101_vm2 = vcmp.eq.f32.partialorder %v8426_v34, %v7978_v43 }
  0xea   : > { %6786 = vmatprep.subr.msk.mxu1 %vm2535_vm1, %v7799_v49  ;;  %vm2276_vm0 = vmand %vm2020_vm12, %vm2148_vm13  ;;  %vm2144_vm12 = vcmp.le.s32.totalorder %v8290_v22, %v7972_v41  ;;  %vm2018_vm1 = vcmp.eq.f32.partialorder %v8227_v15, %v7989_v46  ;;  %v8651_v16 = vadd.s32 160, %v7954_v35 }
  0xeb   : > { %vm2532_vm7 = vmor %vm2404_vm15, %vm2276_vm0  ;;  %vm2013_vm0 = vcmp.eq.f32.partialorder %v8219_v12, %v7978_v43 }
  0xec   : > { %6723 = vmatpush1.msk.msra.mxu0 %vm2532_vm7, %v7799_v49  ;;  %vm2534_vm10 = vmor %vm2406_vm4, %vm2022_vm3  ;;  %vm2402_vm3 = vcmp.gt.f32.partialorder %v8227_v15, %v7989_v46  ;;  %vm2015_vm7 = vcmp.eq.f32.partialorder %v8219_v12, %v7982_v44  ;;  %v8628_v15 = vpop.permute.xlu0 %4635 }
  0xed   : > { %6787 = vmatpush1.msk.msra.mxu1 %vm2534_vm10, %v7799_v49  ;;  %vm2529_vm13 = vmor %vm2401_vm6, %vm2017_vm5  ;;  %vm2397_vm5 = vcmp.gt.f32.partialorder %v8219_v12, %v7978_v43  ;;  %vm2012_vm10 = vcmp.eq.f32.partialorder %v8219_v12, %v7985_v45 }
  0xee   : > { %6724 = vmatprep.subr.msk.mxu0 %vm2529_vm13, %v7799_v49  ;;  %vm2531_vm15 = vmor %vm2403_vm9, %vm2019_vm8  ;;  %vm2399_vm8 = vcmp.gt.f32.partialorder %v8219_v12, %v7982_v44  ;;  %vm2396_vm13 = vcmp.gt.f32.partialorder %v8219_v12, %v7985_v45 }
  0xef   : > { %6788 = vmatprep.subr.msk.mxu1 %vm2531_vm15, %v7799_v49  ;;  %vm2272_vm4 = vmand %vm2016_vm11, %vm2144_vm12  ;;  %vm2140_vm11 = vcmp.le.s32.totalorder %v7954_v35, %v7972_v41  ;;  %vm2014_vm15 = vcmp.eq.f32.partialorder %v8219_v12, %v7989_v46 }
  0xf0   : > { %vm2528_vm6 = vmor %vm2400_vm14, %vm2272_vm4  ;;  %vm2137_vm4 = vcmp.eq.f32.partialorder %v8285_v21, %v7978_v43 }
  0xf1   : > { %6725 = vmatpush1.msk.msra.mxu0 %vm2528_vm6, %v7799_v49  ;;  %vm2530_vm9 = vmor %vm2402_vm3, %vm2018_vm1  ;;  %vm2398_vm1 = vcmp.gt.f32.partialorder %v8219_v12, %v7989_v46  ;;  %vm2521_vm6 = vcmp.gt.f32.partialorder %v8285_v21, %v7978_v43  ;;  %v8603_v12 = vpop.permute.xlu1 %4630 }
  0xf2   : > { %6789 = vmatpush1.msk.msra.mxu1 %vm2530_vm9, %v7799_v49  ;;  %vm2525_vm12 = vmor %vm2397_vm5, %vm2013_vm0  ;;  %vm2265_vm0 = vcmp.le.s32.totalorder %v8339_v26, %v8336_v25  ;;  %vm2523_vm9 = vcmp.gt.f32.partialorder %v8285_v21, %v7982_v44 }
  0xf3   : > { %6726 = vmatprep.subr.msk.mxu0 %vm2525_vm12, %v7799_v49  ;;  %vm2527_vm14 = vmor %vm2399_vm8, %vm2015_vm7  ;;  %vm2139_vm8 = vcmp.eq.f32.partialorder %v8285_v21, %v7982_v44  ;;  %vm2522_vm12 = vcmp.gt.f32.partialorder %v8285_v21, %v7989_v46 }
  0xf4   : > { %6790 = vmatprep.subr.msk.mxu1 %vm2527_vm14, %v7799_v49  ;;  %vm2268_vm3 = vmand %vm2012_vm10, %vm2140_vm11  ;;  %vm2138_vm11 = vcmp.eq.f32.partialorder %v8285_v21, %v7989_v46  ;;  %vm2133_vm14 = vcmp.eq.f32.partialorder %v8272_v20, %v7978_v43 }
  0xf5   : > { %vm2524_vm5 = vmor %vm2396_vm13, %vm2268_vm3  ;;  %vm2520_vm3 = vcmp.gt.f32.partialorder %v8285_v21, %v7985_v45  ;;  %v8653_v18 = vpop.permute.xlu1 %4625  ;;  %v8681_v21 = vadd.s32 152, %v7954_v35 }
  0xf6   : > { %6727 = vmatpush1.msk.msra.mxu0 %vm2524_vm5, %v7799_v49  ;;  %vm2526_vm7 = vmor %vm2398_vm1, %vm2014_vm15  ;;  %vm2261_vm15 = vcmp.le.s32.totalorder %v8362_v28, %v8336_v25  ;;  %vm2135_vm5 = vcmp.eq.f32.partialorder %v8272_v20, %v7982_v44 }
  0xf7   : > { %6791 = vmatpush1.msk.msra.mxu1 %vm2526_vm7, %v7799_v49  ;;  %vm2393_vm10 = vmand %vm2137_vm4, %vm2265_vm0  ;;  %vm2517_vm4 = vcmp.gt.f32.partialorder %v8272_v20, %v7978_v43 }
  0xf8   : > { %vm2649_vm13 = vmor %vm2521_vm6, %vm2393_vm10  ;;  %vm2519_vm6 = vcmp.gt.f32.partialorder %v8272_v20, %v7982_v44 }
  0xf9   : > { %6728 = vmatprep.subr.msk.mxu0 %vm2649_vm13, %v7799_v49  ;;  %vm2651_vm1 = vmor %vm2523_vm9, %vm2139_vm8  ;;  %vm2134_vm8 = vcmp.eq.f32.partialorder %v8272_v20, %v7989_v46  ;;  %vm2518_vm9 = vcmp.gt.f32.partialorder %v8272_v20, %v7989_v46 }
  0xfa   : > { %6792 = vmatprep.subr.msk.mxu1 %vm2651_vm1, %v7799_v49  ;;  %6729 = vmatpush2.msk.msra.mxu0 %vm2520_vm3, %v7799_v49  ;;  %vm2650_vm0 = vmor %vm2522_vm12, %vm2138_vm11  ;;  %vm2129_vm11 = vcmp.eq.f32.partialorder %v8324_v24, %v7978_v43  ;;  %vm2257_vm12 = vcmp.le.s32.totalorder %v8383_v30, %v8336_v25  ;;  %vm2131_vm3 = vcmp.eq.f32.partialorder %v8324_v24, %v7982_v44 }
  0xfb   : > { %6793 = vmatpush2.msk.msra.mxu1 %vm2650_vm0, %v7799_v49  ;;  %vm2389_vm7 = vmand %vm2133_vm14, %vm2261_vm15  ;;  %vm2516_vm14 = vcmp.gt.f32.partialorder %v8272_v20, %v7985_v45  ;;  %vm2513_vm15 = vcmp.gt.f32.partialorder %v8324_v24, %v7978_v43  ;;  %v8666_v20 = vpop.permute.xlu0 %4620 }
  0xfc   : > { %vm2645_vm10 = vmor %vm2517_vm4, %vm2389_vm7  ;;  %vm2515_vm4 = vcmp.gt.f32.partialorder %v8324_v24, %v7982_v44 }
  0xfd   : > { %6730 = vmatprep.subr.msk.mxu0 %vm2645_vm10, %v7799_v49  ;;  %vm2647_vm13 = vmor %vm2519_vm6, %vm2135_vm5  ;;  %vm2130_vm5 = vcmp.eq.f32.partialorder %v8324_v24, %v7989_v46  ;;  %vm2514_vm6 = vcmp.gt.f32.partialorder %v8324_v24, %v7989_v46 }
  0xfe   : > { %6794 = vmatprep.subr.msk.mxu1 %vm2647_vm13, %v7799_v49  ;;  %6731 = vmatpush2.msk.msra.mxu0 %vm2516_vm14, %v7799_v49  ;;  %vm2646_vm1 = vmor %vm2518_vm9, %vm2134_vm8  ;;  %vm2125_vm8 = vcmp.eq.f32.partialorder %v8314_v23, %v7978_v43  ;;  %vm2253_vm9 = vcmp.le.s32.totalorder %v8413_v33, %v8336_v25  ;;  %vm2127_vm14 = vcmp.eq.f32.partialorder %v8314_v23, %v7982_v44 }
  0xff   : > { %6795 = vmatpush2.msk.msra.mxu1 %vm2646_vm1, %v7799_v49  ;;  %vm2385_vm0 = vmand %vm2129_vm11, %vm2257_vm12  ;;  %vm2512_vm11 = vcmp.gt.f32.partialorder %v8324_v24, %v7985_v45  ;;  %vm2509_vm12 = vcmp.gt.f32.partialorder %v8314_v23, %v7978_v43  ;;  %v8706_v24 = vadd.s32 144, %v7954_v35 }
 0x100   : > { %vm2641_vm7 = vmor %vm2513_vm15, %vm2385_vm0  ;;  %vm2511_vm15 = vcmp.gt.f32.partialorder %v8314_v23, %v7982_v44 }
 0x101   : > { %6732 = vmatprep.subr.msk.mxu0 %vm2641_vm7, %v7799_v49  ;;  %vm2643_vm10 = vmor %vm2515_vm4, %vm2131_vm3  ;;  %vm2126_vm3 = vcmp.eq.f32.partialorder %v8314_v23, %v7989_v46  ;;  %vm2510_vm4 = vcmp.gt.f32.partialorder %v8314_v23, %v7989_v46  ;;  %vm2121_vm7 = vcmp.eq.f32.partialorder %v8364_v29, %v7978_v43 }
 0x102   : > { %6796 = vmatprep.subr.msk.mxu1 %vm2643_vm10, %v7799_v49  ;;  %6733 = vmatpush2.msk.msra.mxu0 %vm2512_vm11, %v7799_v49  ;;  %vm2642_vm13 = vmor %vm2514_vm6, %vm2130_vm5  ;;  %vm2249_vm5 = vcmp.le.s32.totalorder %v8438_v39, %v8336_v25  ;;  %vm2123_vm11 = vcmp.eq.f32.partialorder %v8364_v29, %v7982_v44 }
 0x103   : > { %6797 = vmatpush2.msk.msra.mxu1 %vm2642_vm13, %v7799_v49  ;;  %vm2381_vm1 = vmand %vm2125_vm8, %vm2253_vm9  ;;  %vm2508_vm8 = vcmp.gt.f32.partialorder %v8314_v23, %v7985_v45  ;;  %vm2505_vm9 = vcmp.gt.f32.partialorder %v8364_v29, %v7978_v43  ;;  %v8694_v23 = vpop.permute.xlu1 %4615 }
 0x104   : > { %vm2637_vm0 = vmor %vm2509_vm12, %vm2381_vm1  ;;  %vm2507_vm12 = vcmp.gt.f32.partialorder %v8364_v29, %v7982_v44 }
 0x105   : > { %6734 = vmatprep.subr.msk.mxu0 %vm2637_vm0, %v7799_v49  ;;  %vm2639_vm6 = vmor %vm2511_vm15, %vm2127_vm14  ;;  %vm2122_vm14 = vcmp.eq.f32.partialorder %v8364_v29, %v7989_v46  ;;  %vm2506_vm15 = vcmp.gt.f32.partialorder %v8364_v29, %v7989_v46 }
 0x106   : > { %6798 = vmatprep.subr.msk.mxu1 %vm2639_vm6, %v7799_v49  ;;  %6735 = vmatpush2.msk.msra.mxu0 %vm2508_vm8, %v7799_v49  ;;  %vm2638_vm10 = vmor %vm2510_vm4, %vm2126_vm3  ;;  %vm2117_vm3 = vcmp.eq.f32.partialorder %v8349_v27, %v7978_v43  ;;  %vm2245_vm4 = vcmp.le.s32.totalorder %v8463_v50, %v8336_v25  ;;  %vm2119_vm8 = vcmp.eq.f32.partialorder %v8349_v27, %v7982_v44 }
 0x107   : > { %6799 = vmatpush2.msk.msra.mxu1 %vm2638_vm10, %v7799_v49  ;;  %vm2377_vm13 = vmand %vm2121_vm7, %vm2249_vm5  ;;  %vm2504_vm7 = vcmp.gt.f32.partialorder %v8364_v29, %v7985_v45  ;;  %vm2501_vm5 = vcmp.gt.f32.partialorder %v8349_v27, %v7978_v43  ;;  %v8731_v29 = vadd.s32 136, %v7954_v35 }
 0x108   : > { %vm2633_vm1 = vmor %vm2505_vm9, %vm2377_vm13  ;;  %vm2503_vm9 = vcmp.gt.f32.partialorder %v8349_v27, %v7982_v44 }
 0x109   : > { %6736 = vmatprep.subr.msk.mxu0 %vm2633_vm1, %v7799_v49  ;;  %vm2635_vm0 = vmor %vm2507_vm12, %vm2123_vm11  ;;  %vm2118_vm11 = vcmp.eq.f32.partialorder %v8349_v27, %v7989_v46  ;;  %vm2502_vm12 = vcmp.gt.f32.partialorder %v8349_v27, %v7989_v46 }
 0x10a   : > { %6800 = vmatprep.subr.msk.mxu1 %vm2635_vm0, %v7799_v49  ;;  %6737 = vmatpush2.msk.msra.mxu0 %vm2504_vm7, %v7799_v49  ;;  %vm2634_vm6 = vmor %vm2506_vm15, %vm2122_vm14  ;;  %vm2113_vm14 = vcmp.eq.f32.partialorder %v8398_v32, %v7978_v43  ;;  %vm2241_vm15 = vcmp.le.s32.totalorder %v8493_v55, %v8336_v25  ;;  %vm2115_vm7 = vcmp.eq.f32.partialorder %v8398_v32, %v7982_v44 }
 0x10b   : > { %6801 = vmatpush2.msk.msra.mxu1 %vm2634_vm6, %v7799_v49  ;;  %vm2373_vm10 = vmand %vm2117_vm3, %vm2245_vm4  ;;  %vm2500_vm3 = vcmp.gt.f32.partialorder %v8349_v27, %v7985_v45  ;;  %vm2497_vm4 = vcmp.gt.f32.partialorder %v8398_v32, %v7978_v43  ;;  %v8708_v27 = vpop.permute.xlu0 %4610 }
 0x10c   : > { %vm2629_vm13 = vmor %vm2501_vm5, %vm2373_vm10  ;;  %vm2499_vm5 = vcmp.gt.f32.partialorder %v8398_v32, %v7982_v44 }
 0x10d   : > { %6738 = vmatprep.subr.msk.mxu0 %vm2629_vm13, %v7799_v49  ;;  %vm2631_vm1 = vmor %vm2503_vm9, %vm2119_vm8  ;;  %vm2114_vm8 = vcmp.eq.f32.partialorder %v8398_v32, %v7989_v46  ;;  %vm2498_vm9 = vcmp.gt.f32.partialorder %v8398_v32, %v7989_v46 }
 0x10e   : > { %6802 = vmatprep.subr.msk.mxu1 %vm2631_vm1, %v7799_v49  ;;  %6739 = vmatpush2.msk.msra.mxu0 %vm2500_vm3, %v7799_v49  ;;  %vm2630_vm0 = vmor %vm2502_vm12, %vm2118_vm11  ;;  %vm2109_vm11 = vcmp.eq.f32.partialorder %v8385_v31, %v7978_v43  ;;  %vm2237_vm12 = vcmp.le.s32.totalorder %v8518_v59, %v8336_v25  ;;  %vm2111_vm1 = vcmp.eq.f32.partialorder %v8385_v31, %v7982_v44 }
 0x10f   : > { %6803 = vmatpush2.msk.msra.mxu1 %vm2630_vm0, %v7799_v49  ;;  %vm2369_vm6 = vmand %vm2113_vm14, %vm2241_vm15  ;;  %vm2496_vm14 = vcmp.gt.f32.partialorder %v8398_v32, %v7985_v45  ;;  %vm2493_vm15 = vcmp.gt.f32.partialorder %v8385_v31, %v7978_v43  ;;  %v8746_v32 = vpop.permute.xlu0 %4600 }
 0x110   : > { %vm2625_vm10 = vmor %vm2497_vm4, %vm2369_vm6  ;;  %vm2495_vm4 = vcmp.gt.f32.partialorder %v8385_v31, %v7982_v44 }
 0x111   : > { %6740 = vmatprep.subr.msk.mxu0 %vm2625_vm10, %v7799_v49  ;;  %vm2627_vm13 = vmor %vm2499_vm5, %vm2115_vm7  ;;  %vm2110_vm7 = vcmp.eq.f32.partialorder %v8385_v31, %v7989_v46  ;;  %vm2494_vm5 = vcmp.gt.f32.partialorder %v8385_v31, %v7989_v46 }
 0x112   : > { %6804 = vmatprep.subr.msk.mxu1 %vm2627_vm13, %v7799_v49  ;;  %6741 = vmatpush2.msk.msra.mxu0 %vm2496_vm14, %v7799_v49  ;;  %vm2626_vm3 = vmor %vm2498_vm9, %vm2114_vm8  ;;  %vm2105_vm8 = vcmp.eq.f32.partialorder %v8440_v47, %v7978_v43  ;;  %vm2233_vm9 = vcmp.le.s32.totalorder %v8544_v1, %v8336_v25  ;;  %vm2107_vm14 = vcmp.eq.f32.partialorder %v8440_v47, %v7982_v44 }
 0x113   : > { %6805 = vmatpush2.msk.msra.mxu1 %vm2626_vm3, %v7799_v49  ;;  %vm2365_vm0 = vmand %vm2109_vm11, %vm2237_vm12  ;;  %vm2492_vm11 = vcmp.gt.f32.partialorder %v8385_v31, %v7985_v45  ;;  %vm2489_vm12 = vcmp.gt.f32.partialorder %v8440_v47, %v7978_v43  ;;  %vm2106_vm3 = vcmp.eq.f32.partialorder %v8440_v47, %v7989_v46  ;;  %v8733_v31 = vpop.permute.xlu1 %4605 }
 0x114   : > { %vm2621_vm6 = vmor %vm2493_vm15, %vm2365_vm0  ;;  %vm2491_vm15 = vcmp.gt.f32.partialorder %v8440_v47, %v7982_v44 }
 0x115   : > { %6742 = vmatprep.subr.msk.mxu0 %vm2621_vm6, %v7799_v49  ;;  %vm2623_vm10 = vmor %vm2495_vm4, %vm2111_vm1  ;;  %vm2490_vm4 = vcmp.gt.f32.partialorder %v8440_v47, %v7989_v46  ;;  %vm2488_vm6 = vcmp.gt.f32.partialorder %v8440_v47, %v7985_v45 }
 0x116   : > { %6806 = vmatprep.subr.msk.mxu1 %vm2623_vm10, %v7799_v49  ;;  %6743 = vmatpush2.msk.msra.mxu0 %vm2492_vm11, %v7799_v49  ;;  %vm2622_vm13 = vmor %vm2494_vm5, %vm2110_vm7  ;;  %vm2229_vm7 = vcmp.le.s32.totalorder %v8582_v9, %v8336_v25  ;;  %vm2103_vm10 = vcmp.eq.f32.partialorder %v8426_v34, %v7982_v44  ;;  %vm2487_vm11 = vcmp.gt.f32.partialorder %v8426_v34, %v7982_v44 }
 0x117   : > { %6807 = vmatpush2.msk.msra.mxu1 %vm2622_vm13, %v7799_v49  ;;  %vm2361_vm1 = vmand %vm2105_vm8, %vm2233_vm9  ;;  %vm2485_vm8 = vcmp.gt.f32.partialorder %v8426_v34, %v7978_v43  ;;  %vm2102_vm13 = vcmp.eq.f32.partialorder %v8426_v34, %v7989_v46  ;;  %v8774_v47 = vpop.permute.xlu1 %4595 }
 0x118   : > { %vm2617_vm0 = vmor %vm2489_vm12, %vm2361_vm1  ;;  %vm2097_vm1 = vcmp.eq.f32.partialorder %v8478_v53, %v7978_v43 }
 0x119   : > { %6744 = vmatprep.subr.msk.mxu0 %vm2617_vm0, %v7799_v49  ;;  %vm2619_vm5 = vmor %vm2491_vm15, %vm2107_vm14  ;;  %vm2486_vm14 = vcmp.gt.f32.partialorder %v8426_v34, %v7989_v46  ;;  %vm2484_vm0 = vcmp.gt.f32.partialorder %v8426_v34, %v7985_v45  ;;  %v8761_v34 = vadd.s32 128, %v7954_v35 }
 0x11a   : > { %6808 = vmatprep.subr.msk.mxu1 %vm2619_vm5, %v7799_v49  ;;  %6745 = vmatpush2.msk.msra.mxu0 %vm2488_vm6, %v7799_v49  ;;  %vm2618_vm9 = vmor %vm2490_vm4, %vm2106_vm3  ;;  %vm2225_vm3 = vcmp.le.s32.totalorder %v8626_v14, %v8336_v25  ;;  %vm2099_vm5 = vcmp.eq.f32.partialorder %v8478_v53, %v7982_v44  ;;  %vm2483_vm6 = vcmp.gt.f32.partialorder %v8478_v53, %v7982_v44 }
 0x11b   : > { %6809 = vmatpush2.msk.msra.mxu1 %vm2618_vm9, %v7799_v49  ;;  %vm2357_vm12 = vmand %vm2101_vm2, %vm2229_vm7  ;;  %vm2481_vm2 = vcmp.gt.f32.partialorder %v8478_v53, %v7978_v43  ;;  %vm2098_vm9 = vcmp.eq.f32.partialorder %v8478_v53, %v7989_v46 }
 0x11c   : > { %vm2613_vm15 = vmor %vm2485_vm8, %vm2357_vm12  ;;  %vm2093_vm12 = vcmp.eq.f32.partialorder %v8465_v51, %v7978_v43 }
 0x11d   : > { %6746 = vmatprep.subr.msk.mxu0 %vm2613_vm15, %v7799_v49  ;;  %vm2615_vm4 = vmor %vm2487_vm11, %vm2103_vm10  ;;  %vm2482_vm10 = vcmp.gt.f32.partialorder %v8478_v53, %v7989_v46  ;;  %vm2480_vm15 = vcmp.gt.f32.partialorder %v8478_v53, %v7985_v45  ;;  %v4882_v53 = vadd.s32 256, %v7975_v42  ;;  %v4881_v42 = vadd.s32 256, %v8000_v48 }
 0x11e   : > { %6810 = vmatprep.subr.msk.mxu1 %vm2615_vm4, %v7799_v49  ;;  %6747 = vmatpush2.msk.msra.mxu0 %vm2484_vm0, %v7799_v49  ;;  %vm2614_vm7 = vmor %vm2486_vm14, %vm2102_vm13  ;;  %vm2221_vm13 = vcmp.le.s32.totalorder %v8651_v16, %v8336_v25  ;;  %vm2095_vm4 = vcmp.eq.f32.partialorder %v8465_v51, %v7982_v44  ;;  %vm2479_vm0 = vcmp.gt.f32.partialorder %v8465_v51, %v7982_v44 }
 0x11f   : > { %6811 = vmatpush2.msk.msra.mxu1 %vm2614_vm7, %v7799_v49  ;;  %vm2353_vm8 = vmand %vm2097_vm1, %vm2225_vm3  ;;  %vm2477_vm1 = vcmp.gt.f32.partialorder %v8465_v51, %v7978_v43  ;;  %vm2094_vm7 = vcmp.eq.f32.partialorder %v8465_v51, %v7989_v46 }
 0x120   : > { %vm2609_vm11 = vmor %vm2481_vm2, %vm2353_vm8  ;;  %vm2089_vm8 = vcmp.eq.f32.partialorder %v8520_v61, %v7978_v43 }
 0x121   : > { %6748 = vmatprep.subr.msk.mxu0 %vm2609_vm11, %v7799_v49  ;;  %vm2611_vm14 = vmor %vm2483_vm6, %vm2099_vm5  ;;  %vm2478_vm5 = vcmp.gt.f32.partialorder %v8465_v51, %v7989_v46  ;;  %vm2476_vm11 = vcmp.gt.f32.partialorder %v8465_v51, %v7985_v45  ;;  %v8785_v51 = vpop.permute.xlu0 %4590 }
 0x122   : > { %6812 = vmatprep.subr.msk.mxu1 %vm2611_vm14, %v7799_v49  ;;  %6749 = vmatpush2.msk.msra.mxu0 %vm2480_vm15, %v7799_v49  ;;  %vm2610_vm3 = vmor %vm2482_vm10, %vm2098_vm9  ;;  %vm2217_vm9 = vcmp.le.s32.totalorder %v8681_v21, %v8336_v25  ;;  %vm2091_vm14 = vcmp.eq.f32.partialorder %v8520_v61, %v7982_v44  ;;  %vm2475_vm15 = vcmp.gt.f32.partialorder %v8520_v61, %v7982_v44 }
 0x123   : > { %6813 = vmatpush2.msk.msra.mxu1 %vm2610_vm3, %v7799_v49  ;;  %vm2349_vm2 = vmand %vm2093_vm12, %vm2221_vm13  ;;  %vm2473_vm12 = vcmp.gt.f32.partialorder %v8520_v61, %v7978_v43  ;;  %vm2090_vm3 = vcmp.eq.f32.partialorder %v8520_v61, %v7989_v46 }
 0x124   : > { %vm2605_vm6 = vmor %vm2477_vm1, %vm2349_vm2  ;;  %vm2085_vm2 = vcmp.eq.f32.partialorder %v8506_v57, %v7978_v43 }
 0x125   : > { %6750 = vmatprep.subr.msk.mxu0 %vm2605_vm6, %v7799_v49  ;;  %vm2607_vm10 = vmor %vm2479_vm0, %vm2095_vm4  ;;  %vm2474_vm4 = vcmp.gt.f32.partialorder %v8520_v61, %v7989_v46  ;;  %vm2472_vm6 = vcmp.gt.f32.partialorder %v8520_v61, %v7985_v45  ;;  %v8832_v48 = vpop.permute.xlu0 %4580  ;;  %v4880_v61 = vadd.s32 256, %v8020_v52  ;;  %v4879_v52 = vadd.s32 256, %v8037_v54 }
 0x126   : > { %6814 = vmatprep.subr.msk.mxu1 %vm2607_vm10, %v7799_v49  ;;  %6751 = vmatpush2.msk.msra.mxu0 %vm2476_vm11, %v7799_v49  ;;  %vm2606_vm13 = vmor %vm2478_vm5, %vm2094_vm7  ;;  %vm2213_vm7 = vcmp.le.s32.totalorder %v8706_v24, %v8336_v25  ;;  %vm2087_vm10 = vcmp.eq.f32.partialorder %v8506_v57, %v7982_v44  ;;  %vm2471_vm11 = vcmp.gt.f32.partialorder %v8506_v57, %v7982_v44 }
 0x127   : > { %6815 = vmatpush2.msk.msra.mxu1 %vm2606_vm13, %v7799_v49  ;;  %vm2345_vm1 = vmand %vm2089_vm8, %vm2217_vm9  ;;  %vm2469_vm8 = vcmp.gt.f32.partialorder %v8506_v57, %v7978_v43  ;;  %vm2086_vm13 = vcmp.eq.f32.partialorder %v8506_v57, %v7989_v46 }
 0x128   : > { %vm2601_vm0 = vmor %vm2473_vm12, %vm2345_vm1  ;;  %vm2081_vm1 = vcmp.eq.f32.partialorder %v8562_v4, %v7978_v43 }
 0x129   : > { %6752 = vmatprep.subr.msk.mxu0 %vm2601_vm0, %v7799_v49  ;;  %vm2603_vm5 = vmor %vm2475_vm15, %vm2091_vm14  ;;  %vm2470_vm14 = vcmp.gt.f32.partialorder %v8506_v57, %v7989_v46  ;;  %vm2468_vm0 = vcmp.gt.f32.partialorder %v8506_v57, %v7985_v45  ;;  %v8794_v57 = vadd.s32 256, %v7972_v41 }
 0x12a   : > { %6816 = vmatprep.subr.msk.mxu1 %vm2603_vm5, %v7799_v49  ;;  %6753 = vmatpush2.msk.msra.mxu0 %vm2472_vm6, %v7799_v49  ;;  %vm2602_vm9 = vmor %vm2474_vm4, %vm2090_vm3  ;;  %vm2209_vm3 = vcmp.le.s32.totalorder %v8731_v29, %v8336_v25  ;;  %vm2083_vm5 = vcmp.eq.f32.partialorder %v8562_v4, %v7982_v44  ;;  %vm2467_vm6 = vcmp.gt.f32.partialorder %v8562_v4, %v7982_v44 }
 0x12b   : > { %6817 = vmatpush2.msk.msra.mxu1 %vm2602_vm9, %v7799_v49  ;;  %vm2341_vm12 = vmand %vm2085_vm2, %vm2213_vm7  ;;  %vm2465_vm2 = vcmp.gt.f32.partialorder %v8562_v4, %v7978_v43  ;;  %vm2082_vm9 = vcmp.eq.f32.partialorder %v8562_v4, %v7989_v46 }
 0x12c   : > { %vm2597_vm15 = vmor %vm2469_vm8, %vm2341_vm12  ;;  %vm2077_vm12 = vcmp.eq.f32.partialorder %v8546_v3, %v7978_v43 }
 0x12d   : > { %6754 = vmatprep.subr.msk.mxu0 %vm2597_vm15, %v7799_v49  ;;  %vm2599_vm4 = vmor %vm2471_vm11, %vm2087_vm10  ;;  %vm2466_vm10 = vcmp.gt.f32.partialorder %v8562_v4, %v7989_v46  ;;  %vm2464_vm15 = vcmp.gt.f32.partialorder %v8562_v4, %v7985_v45  ;;  %v4876_v4 = vadd.s32 256, %v8088_v60  ;;  %v4875_v60 = vadd.s32 256, %v8105_v62 }
 0x12e   : > { %6818 = vmatprep.subr.msk.mxu1 %vm2599_vm4, %v7799_v49  ;;  %6755 = vmatpush2.msk.msra.mxu0 %vm2468_vm0, %v7799_v49  ;;  %vm2598_vm7 = vmor %vm2470_vm14, %vm2086_vm13  ;;  %vm2205_vm13 = vcmp.le.s32.totalorder %v8761_v34, %v8336_v25  ;;  %vm2079_vm4 = vcmp.eq.f32.partialorder %v8546_v3, %v7982_v44  ;;  %vm2463_vm0 = vcmp.gt.f32.partialorder %v8546_v3, %v7982_v44  ;;  %v8815_v25 = vpop.permute.xlu1 %4585 }
 0x12f   : > { %6819 = vmatpush2.msk.msra.mxu1 %vm2598_vm7, %v7799_v49  ;;  %vm2337_vm8 = vmand %vm2081_vm1, %vm2209_vm3  ;;  %vm2461_vm1 = vcmp.gt.f32.partialorder %v8546_v3, %v7978_v43  ;;  %vm2078_vm7 = vcmp.eq.f32.partialorder %v8546_v3, %v7989_v46 }
 0x130   : > { %vm2593_vm11 = vmor %vm2465_vm2, %vm2337_vm8  ;;  %vm4802_vm8 = vcmp.eq.f32.partialorder %v8628_v15, %v7982_v44 }
 0x131   : > { %6756 = vmatprep.subr.msk.mxu0 %vm2593_vm11, %v7799_v49  ;;  %vm2595_vm14 = vmor %vm2467_vm6, %vm2083_vm5  ;;  %vm2462_vm5 = vcmp.gt.f32.partialorder %v8546_v3, %v7989_v46  ;;  %vm2460_vm11 = vcmp.gt.f32.partialorder %v8546_v3, %v7985_v45 }
 0x132   : > { %6820 = vmatprep.subr.msk.mxu1 %vm2595_vm14, %v7799_v49  ;;  %6757 = vmatpush2.msk.msra.mxu0 %vm2464_vm15, %v7799_v49  ;;  %vm2594_vm3 = vmor %vm2466_vm10, %vm2082_vm9  ;;  %vm5218_vm9 = vcmp.gt.f32.partialorder %v8628_v15, %v7982_v44  ;;  %vm4961_vm14 = vcmp.le.s32.totalorder %v4882_v53, %v8794_v57  ;;  %v8883_v54 = vpop.permute.xlu1 %4575 }
 0x133   : > { %6821 = vmatpush2.msk.msra.mxu1 %vm2594_vm3, %v7799_v49  ;;  %vm2333_vm2 = vmand %vm2077_vm12, %vm2205_vm13  ;;  %vm5216_vm12 = vcmp.gt.f32.partialorder %v8628_v15, %v7978_v43  ;;  %vm4801_vm13 = vcmp.eq.f32.partialorder %v8628_v15, %v7989_v46 }
 0x134   : > { %vm2589_vm6 = vmor %vm2461_vm1, %vm2333_vm2  ;;  %vm5217_vm1 = vcmp.gt.f32.partialorder %v8628_v15, %v7989_v46  ;;  %vm5215_vm2 = vcmp.gt.f32.partialorder %v8628_v15, %v7985_v45 }
 0x135   : > { %6758 = vmatprep.subr.msk.mxu0 %vm2589_vm6, %v7799_v49  ;;  %vm2591_vm10 = vmor %vm2463_vm0, %vm2079_vm4  ;;  %vm4798_vm4 = vcmp.eq.f32.partialorder %v8603_v12, %v7982_v44  ;;  %vm5214_vm0 = vcmp.gt.f32.partialorder %v8603_v12, %v7982_v44  ;;  %vm4957_vm6 = vcmp.le.s32.totalorder %v4881_v42, %v8794_v57 }
 0x136   : > { %6822 = vmatprep.subr.msk.mxu1 %vm2591_vm10, %v7799_v49  ;;  %6759 = vmatpush2.msk.msra.mxu0 %vm2460_vm11, %v7799_v49  ;;  %vm2590_vm15 = vmor %vm2462_vm5, %vm2078_vm7  ;;  %vm4797_vm5 = vcmp.eq.f32.partialorder %v8603_v12, %v7989_v46  ;;  %vm5213_vm10 = vcmp.gt.f32.partialorder %v8603_v12, %v7989_v46  ;;  %v8956_v3 = vpop.permute.xlu1 %4565 }
 0x137   : > { %6823 = vmatpush2.msk.msra.mxu1 %vm2590_vm15, %v7799_v49  ;;  %2977 = vmatmul.mubr.f32.vlgmr.msra.gmra.mxu0 %v8266_v19  ;;  %vm5346_vm3 = vmor %vm5218_vm9, %vm4802_vm8  ;;  %vm5212_vm9 = vcmp.gt.f32.partialorder %v8603_v12, %v7978_v43 }
 0x138   : > { %3048 = vmatmul.mubr.f32.vlgmr.msra.gmra.mxu1 %v8266_v19  ;;  %7464 = vmatprep.subr.msk.mxu0 %vm5216_vm12, %v7799_v49  ;;  %vm5089_vm7 = vmand %vm4801_vm13, %vm4961_vm14  ;;  %vm5211_vm12 = vcmp.gt.f32.partialorder %v8603_v12, %v7985_v45  ;;  %vm4794_vm13 = vcmp.eq.f32.partialorder %v8653_v18, %v7982_v44  ;;  %vm5210_vm14 = vcmp.gt.f32.partialorder %v8653_v18, %v7982_v44  ;;  %v8905_v19 = vpop.permute.xlu0 %4570  ;;  %v4872_v12 = vadd.s32 256, %v8158_v5 }
 0x139   : > { %7528 = vmatprep.subr.msk.mxu1 %vm5346_vm3, %v7799_v49  ;;  %7465 = vmatpush1.msk.msra.mxu0 %vm5215_vm2, %v7799_v49  ;;  %vm5345_vm8 = vmor %vm5217_vm1, %vm5089_vm7  ;;  %vm5208_vm1 = vcmp.gt.f32.partialorder %v8653_v18, %v7978_v43  ;;  %vm4793_vm3 = vcmp.eq.f32.partialorder %v8653_v18, %v7989_v46  ;;  %vm5207_vm2 = vcmp.gt.f32.partialorder %v8653_v18, %v7985_v45  ;;  %v4871_v5 = vadd.s32 256, %v8175_v6 }
 0x13a   : > { %7529 = vmatpush1.msk.msra.mxu1 %vm5345_vm8, %v7799_v49  ;;  %7466 = vmatprep.subr.msk.mxu0 %vm5212_vm9, %v7799_v49  ;;  %vm5342_vm11 = vmor %vm5214_vm0, %vm4798_vm4  ;;  %vm4953_vm4 = vcmp.le.s32.totalorder %v4880_v61, %v8794_v57  ;;  %vm5209_vm7 = vcmp.gt.f32.partialorder %v8653_v18, %v7989_v46  ;;  %vm4790_vm8 = vcmp.eq.f32.partialorder %v8666_v20, %v7982_v44  ;;  %v9030_v62 = vpop.permute.xlu1 %4715  ;;  %v4870_v18 = vadd.s32 256, %v8209_v10 }
 0x13b   : > { %7530 = vmatprep.subr.msk.mxu1 %vm5342_vm11, %v7799_v49  ;;  %7467 = vmatpush1.msk.msra.mxu0 %vm5211_vm12, %v7799_v49  ;;  %vm5085_vm15 = vmand %vm4797_vm5, %vm4957_vm6  ;;  %vm5204_vm6 = vcmp.gt.f32.partialorder %v8666_v20, %v7978_v43  ;;  %vm5206_vm9 = vcmp.gt.f32.partialorder %v8666_v20, %v7982_v44  ;;  %vm5203_vm11 = vcmp.gt.f32.partialorder %v8666_v20, %v7985_v45  ;;  %v4869_v10 = vadd.s32 256, %v8246_v17 }
 0x13c   : > { %vm5341_vm0 = vmor %vm5213_vm10, %vm5085_vm15  ;;  %7468 = vmatprep.subr.msk.mxu0 %vm5208_vm1, %v7799_v49  ;;  %5735 = vmatprep.mubr.f32.mxu0 %v8595_v11  ;;  %vm4789_vm12 = vcmp.eq.f32.partialorder %v8666_v20, %v7989_v46  ;;  %vm5205_vm15 = vcmp.gt.f32.partialorder %v8666_v20, %v7989_v46  ;;  %vm5200_vm1 = vcmp.gt.f32.partialorder %v8694_v23, %v7978_v43  ;;  %v8978_v58 = vpop.permute.xlu0 %4560 }
 0x13d   : > { %7531 = vmatpush1.msk.msra.mxu1 %vm5341_vm0, %v7799_v49  ;;  %vm5338_vm5 = vmor %vm5210_vm14, %vm4794_vm13  ;;  %7469 = vmatpush1.msk.msra.mxu0 %vm5207_vm2, %v7799_v49  ;;  %vm4949_vm13 = vcmp.le.s32.totalorder %v4879_v52, %v8794_v57  ;;  %vm5202_vm0 = vcmp.gt.f32.partialorder %v8694_v23, %v7982_v44  ;;  %vm5199_vm2 = vcmp.gt.f32.partialorder %v8694_v23, %v7985_v45 }
 0x13e   : > { %7532 = vmatprep.subr.msk.mxu1 %vm5338_vm5, %v7799_v49  ;;  %vm5081_vm10 = vmand %vm4793_vm3, %vm4953_vm4  ;;  %7470 = vmatprep.subr.msk.mxu0 %vm5204_vm6, %v7799_v49  ;;  %vm4786_vm4 = vcmp.eq.f32.partialorder %v8694_v23, %v7982_v44  ;;  %vm4785_vm5 = vcmp.eq.f32.partialorder %v8694_v23, %v7989_v46  ;;  %vm4945_vm6 = vcmp.le.s32.totalorder %v4878_v63, %v8794_v57  ;;  %v9104_v2 = vpop.permute.xlu1 %4705  ;;  %v5824_v63 = vstv %s277_s6 }
 0x13f   : > { %vm5337_vm14 = vmor %vm5209_vm7, %vm5081_vm10  ;;  %7471 = vmatpush1.msk.msra.mxu0 %vm5203_vm11, %v7799_v49  ;;  %5806 = vmatprep.mubr.f32.mxu1 %v8595_v11  ;;  %vm5201_vm10 = vcmp.gt.f32.partialorder %v8694_v23, %v7989_v46  ;;  %vm5195_vm11 = vcmp.gt.f32.partialorder %v8708_v27, %v7985_v45  ;;  %v4868_v23 = vadd.s32 256, %v8290_v22  ;;  %v4867_v22 = vadd.s32 256, %v7954_v35 }
 0x140   : > { %7533 = vmatpush1.msk.msra.mxu1 %vm5337_vm14, %v7799_v49  ;;  %vm5334_vm3 = vmor %vm5206_vm9, %vm4790_vm8  ;;  %7472 = vmatprep.subr.msk.mxu0 %vm5200_vm1, %v7799_v49  ;;  %vm5196_vm8 = vcmp.gt.f32.partialorder %v8708_v27, %v7978_v43  ;;  %vm5198_vm14 = vcmp.gt.f32.partialorder %v8708_v27, %v7982_v44  ;;  %v9052_v7 = vpop.permute.xlu0 %4710 }
 0x141   : > { %7534 = vmatprep.subr.msk.mxu1 %vm5334_vm3, %v7799_v49  ;;  %vm5077_vm7 = vmand %vm4789_vm12, %vm4949_vm13  ;;  %7473 = vmatpush1.msk.msra.mxu0 %vm5199_vm2, %v7799_v49  ;;  %vm4782_vm13 = vcmp.eq.f32.partialorder %v8708_v27, %v7982_v44  ;;  %vm4781_vm3 = vcmp.eq.f32.partialorder %v8708_v27, %v7989_v46 }
 0x142   : > { %vm5333_vm9 = vmor %vm5205_vm15, %vm5077_vm7  ;;  %7474 = vmatprep.subr.msk.mxu0 %vm5196_vm8, %v7799_v49  ;;  %vm5192_vm15 = vcmp.gt.f32.partialorder %v8733_v31, %v7978_v43  ;;  %vm5197_vm7 = vcmp.gt.f32.partialorder %v8708_v27, %v7989_v46  ;;  %vm4778_vm8 = vcmp.eq.f32.partialorder %v8733_v31, %v7982_v44  ;;  %v9178_v6 = vpop.permute.xlu1 %4695 }
 0x143   : > { %7535 = vmatpush1.msk.msra.mxu1 %vm5333_vm9, %v7799_v49  ;;  %vm5330_vm12 = vmor %vm5202_vm0, %vm4786_vm4  ;;  %7475 = vmatpush1.msk.msra.mxu0 %vm5195_vm11, %v7799_v49  ;;  %vm4941_vm4 = vcmp.le.s32.totalorder %v4877_v56, %v8794_v57  ;;  %vm5191_vm0 = vcmp.gt.f32.partialorder %v8733_v31, %v7985_v45  ;;  %vm5194_vm9 = vcmp.gt.f32.partialorder %v8733_v31, %v7982_v44  ;;  %v283_v56 = vld [vmem:[%s8192_s22] sm:$0xf]  ;;  %s7692_s22 = scalar_lea.vmem %s7691_s21, 32 }
 0x144   : > { %7536 = vmatprep.subr.msk.mxu1 %vm5330_vm12, %v7799_v49  ;;  %vm5073_vm1 = vmand %vm4785_vm5, %vm4945_vm6  ;;  %7476 = vmatprep.subr.msk.mxu0 %vm5192_vm15, %v7799_v49  ;;  %vm5188_vm5 = vcmp.gt.f32.partialorder %v8746_v32, %v7978_v43  ;;  %vm4777_vm12 = vcmp.eq.f32.partialorder %v8733_v31, %v7989_v46  ;;  %v9126_v11 = vpop.permute.xlu0 %4700 }
 0x145   : > { %vm5329_vm2 = vmor %vm5201_vm10, %vm5073_vm1  ;;  %7477 = vmatpush1.msk.msra.mxu0 %vm5191_vm0, %v7799_v49  ;;  %vm5187_vm10 = vcmp.gt.f32.partialorder %v8746_v32, %v7985_v45  ;;  %vm5193_vm1 = vcmp.gt.f32.partialorder %v8733_v31, %v7989_v46  ;;  %vm4774_vm0 = vcmp.eq.f32.partialorder %v8746_v32, %v7982_v44  ;;  %v9343_v31 = vadd.s32 384, %v7972_v41 }
 0x146   : > { %7537 = vmatpush1.msk.msra.mxu1 %vm5329_vm2, %v7799_v49  ;;  %vm5326_vm6 = vmor %vm5198_vm14, %vm4782_vm13  ;;  %7478 = vmatprep.subr.msk.mxu0 %vm5188_vm5, %v7799_v49  ;;  %vm4937_vm13 = vcmp.le.s32.totalorder %v4876_v4, %v8794_v57  ;;  %vm5184_vm14 = vcmp.gt.f32.partialorder %v8774_v47, %v7978_v43  ;;  %vm5190_vm2 = vcmp.gt.f32.partialorder %v8746_v32, %v7982_v44  ;;  %v9252_v17 = vpop.permute.xlu1 %4685  ;;  %v4897_v41 = vadd.s32 256, %v8362_v28 }
 0x147   : > { %7538 = vmatprep.subr.msk.mxu1 %vm5326_vm6, %v7799_v49  ;;  %vm5069_vm11 = vmand %vm4781_vm3, %vm4941_vm4  ;;  %7479 = vmatpush1.msk.msra.mxu0 %vm5187_vm10, %v7799_v49  ;;  %vm5183_vm3 = vcmp.gt.f32.partialorder %v8774_v47, %v7985_v45  ;;  %vm4773_vm6 = vcmp.eq.f32.partialorder %v8746_v32, %v7989_v46 }
 0x148   : > { %vm5325_vm15 = vmor %vm5197_vm7, %vm5069_vm11  ;;  %7480 = vmatprep.subr.msk.mxu0 %vm5184_vm14, %v7799_v49  ;;  %vm5180_vm7 = vcmp.gt.f32.partialorder %v8785_v51, %v7978_v43  ;;  %vm5189_vm11 = vcmp.gt.f32.partialorder %v8746_v32, %v7989_v46  ;;  %vm4770_vm14 = vcmp.eq.f32.partialorder %v8774_v47, %v7982_v44  ;;  %v9200_v15 = vpop.permute.xlu0 %4690  ;;  %v4898_v32 = vadd.s32 256, %v8339_v26 }
 0x149   : > { %7539 = vmatpush1.msk.msra.mxu1 %vm5325_vm15, %v7799_v49  ;;  %vm5322_vm4 = vmor %vm5194_vm9, %vm4778_vm8  ;;  %7481 = vmatpush1.msk.msra.mxu0 %vm5183_vm3, %v7799_v49  ;;  %vm4933_vm8 = vcmp.le.s32.totalorder %v4875_v60, %v8794_v57  ;;  %vm5179_vm9 = vcmp.gt.f32.partialorder %v8785_v51, %v7985_v45  ;;  %vm5186_vm15 = vcmp.gt.f32.partialorder %v8774_v47, %v7982_v44  ;;  %v4896_v26 = vadd.s32 256, %v8383_v30 }
 0x14a   : > { %7540 = vmatprep.subr.msk.mxu1 %vm5322_vm4, %v7799_v49  ;;  %vm5065_vm5 = vmand %vm4777_vm12, %vm4937_vm13  ;;  %7482 = vmatprep.subr.msk.mxu0 %vm5180_vm7, %v7799_v49  ;;  %vm5176_vm12 = vcmp.gt.f32.partialorder %v8815_v25, %v7978_v43  ;;  %vm4769_vm4 = vcmp.eq.f32.partialorder %v8774_v47, %v7989_v46  ;;  %v9323_v27 = vpop.permute.xlu1 %4675  ;;  %v4895_v30 = vadd.s32 256, %v8413_v33  ;;  %v4894_v33 = vadd.s32 256, %v8438_v39 }
 0x14b   : > { %vm5321_vm10 = vmor %vm5193_vm1, %vm5065_vm5  ;;  %7483 = vmatpush1.msk.msra.mxu0 %vm5179_vm9, %v7799_v49  ;;  %vm5175_vm1 = vcmp.gt.f32.partialorder %v8815_v25, %v7985_v45  ;;  %vm5185_vm5 = vcmp.gt.f32.partialorder %v8774_v47, %v7989_v46  ;;  %vm4766_vm9 = vcmp.eq.f32.partialorder %v8785_v51, %v7982_v44  ;;  %v4893_v39 = vadd.s32 256, %v8463_v50 }
 0x14c   : > { %7541 = vmatpush1.msk.msra.mxu1 %vm5321_vm10, %v7799_v49  ;;  %vm5318_vm13 = vmor %vm5190_vm2, %vm4774_vm0  ;;  %7484 = vmatprep.subr.msk.mxu0 %vm5176_vm12, %v7799_v49  ;;  %vm4929_vm0 = vcmp.le.s32.totalorder %v4874_v8, %v8794_v57  ;;  %vm5172_vm2 = vcmp.gt.f32.partialorder %v8832_v48, %v7978_v43  ;;  %vm5182_vm10 = vcmp.gt.f32.partialorder %v8785_v51, %v7982_v44  ;;  %v9274_v20 = vpop.permute.xlu0 %4680  ;;  %v4892_v50 = vadd.s32 256, %v8493_v55 }
 0x14d   : > { %7542 = vmatprep.subr.msk.mxu1 %vm5318_vm13, %v7799_v49  ;;  %vm5061_vm3 = vmand %vm4773_vm6, %vm4933_vm8  ;;  %7485 = vmatpush1.msk.msra.mxu0 %vm5175_vm1, %v7799_v49  ;;  %vm5171_vm6 = vcmp.gt.f32.partialorder %v8832_v48, %v7985_v45  ;;  %vm4765_vm13 = vcmp.eq.f32.partialorder %v8785_v51, %v7989_v46  ;;  %v4891_v55 = vadd.s32 256, %v8518_v59  ;;  %v4890_v59 = vadd.s32 256, %v8544_v1 }
 0x14e   : > { %vm5317_vm7 = vmor %vm5189_vm11, %vm5061_vm3  ;;  %7486 = vmatprep.subr.msk.mxu0 %vm5172_vm2, %v7799_v49  ;;  %vm5168_vm11 = vcmp.gt.f32.partialorder %v8883_v54, %v7978_v43  ;;  %vm5181_vm3 = vcmp.gt.f32.partialorder %v8785_v51, %v7989_v46  ;;  %vm4762_vm2 = vcmp.eq.f32.partialorder %v8815_v25, %v7982_v44  ;;  %v9400_v28 = vpop.permute.xlu1 %4665  ;;  %v4889_v1 = vadd.s32 256, %v8582_v9 }
 0x14f   : > { %7543 = vmatpush1.msk.msra.mxu1 %vm5317_vm7, %v7799_v49  ;;  %vm5314_vm8 = vmor %vm5186_vm15, %vm4770_vm14  ;;  %7487 = vmatpush1.msk.msra.mxu0 %vm5171_vm6, %v7799_v49  ;;  %vm4925_vm14 = vcmp.le.s32.totalorder %v4873_v0, %v8794_v57  ;;  %vm5167_vm15 = vcmp.gt.f32.partialorder %v8883_v54, %v7985_v45  ;;  %vm5178_vm7 = vcmp.gt.f32.partialorder %v8815_v25, %v7982_v44  ;;  %v4888_v9 = vadd.s32 256, %v8626_v14 }
 0x150   : > { %7544 = vmatprep.subr.msk.mxu1 %vm5314_vm8, %v7799_v49  ;;  %vm5057_vm12 = vmand %vm4769_vm4, %vm4929_vm0  ;;  %7488 = vmatprep.subr.msk.mxu0 %vm5168_vm11, %v7799_v49  ;;  %vm5164_vm4 = vcmp.gt.f32.partialorder %v8905_v19, %v7978_v43  ;;  %vm4761_vm8 = vcmp.eq.f32.partialorder %v8815_v25, %v7989_v46  ;;  %v9349_v47 = vpop.permute.xlu0 %4670  ;;  %v4887_v14 = vadd.s32 256, %v8651_v16  ;;  %v4884_v16 = vadd.s32 256, %v8731_v29 }
 0x151   : > { %vm5313_vm1 = vmor %vm5185_vm5, %vm5057_vm12  ;;  %7489 = vmatpush1.msk.msra.mxu0 %vm5167_vm15, %v7799_v49  ;;  %vm5163_vm5 = vcmp.gt.f32.partialorder %v8905_v19, %v7985_v45  ;;  %vm5177_vm12 = vcmp.gt.f32.partialorder %v8815_v25, %v7989_v46  ;;  %vm4758_vm15 = vcmp.eq.f32.partialorder %v8832_v48, %v7982_v44 }
 0x152   : > { %7545 = vmatpush1.msk.msra.mxu1 %vm5313_vm1, %v7799_v49  ;;  %vm5310_vm0 = vmor %vm5182_vm10, %vm4766_vm9  ;;  %7490 = vmatprep.subr.msk.mxu0 %vm5164_vm4, %v7799_v49  ;;  %vm4921_vm9 = vcmp.le.s32.totalorder %v4872_v12, %v8794_v57  ;;  %vm5160_vm10 = vcmp.gt.f32.partialorder %v8956_v3, %v7978_v43  ;;  %vm5174_vm1 = vcmp.gt.f32.partialorder %v8832_v48, %v7982_v44  ;;  %v9470_v53 = vpop.permute.xlu1 %4655 }
 0x153   : > { %7546 = vmatprep.subr.msk.mxu1 %vm5310_vm0, %v7799_v49  ;;  %vm5053_vm6 = vmand %vm4765_vm13, %vm4925_vm14  ;;  %7491 = vmatpush1.msk.msra.mxu0 %vm5163_vm5, %v7799_v49  ;;  %vm5159_vm13 = vcmp.gt.f32.partialorder %v8956_v3, %v7985_v45  ;;  %vm4757_vm0 = vcmp.eq.f32.partialorder %v8832_v48, %v7989_v46 }
 0x154   : > { %vm5309_vm11 = vmor %vm5181_vm3, %vm5053_vm6  ;;  %7492 = vmatprep.subr.msk.mxu0 %vm5160_vm10, %v7799_v49  ;;  %vm5156_vm3 = vcmp.gt.f32.partialorder %v8978_v58, %v7978_v43  ;;  %vm5173_vm6 = vcmp.gt.f32.partialorder %v8832_v48, %v7989_v46  ;;  %vm4754_vm10 = vcmp.eq.f32.partialorder %v8883_v54, %v7982_v44  ;;  %v9423_v51 = vpop.permute.xlu0 %4660 }
 0x155   : > { %7547 = vmatpush1.msk.msra.mxu1 %vm5309_vm11, %v7799_v49  ;;  %vm5306_vm14 = vmor %vm5178_vm7, %vm4762_vm2  ;;  %7493 = vmatpush1.msk.msra.mxu0 %vm5159_vm13, %v7799_v49  ;;  %vm4917_vm2 = vcmp.le.s32.totalorder %v4871_v5, %v8794_v57  ;;  %vm5155_vm7 = vcmp.gt.f32.partialorder %v8978_v58, %v7985_v45  ;;  %vm5170_vm11 = vcmp.gt.f32.partialorder %v8883_v54, %v7982_v44 }
 0x156   : > { %7548 = vmatprep.subr.msk.mxu1 %vm5306_vm14, %v7799_v49  ;;  %vm5049_vm4 = vmand %vm4761_vm8, %vm4921_vm9  ;;  %7494 = vmatprep.subr.msk.mxu0 %vm5156_vm3, %v7799_v49  ;;  %vm5280_vm8 = vcmp.gt.f32.partialorder %v9030_v62, %v7978_v43  ;;  %vm4753_vm14 = vcmp.eq.f32.partialorder %v8883_v54, %v7989_v46  ;;  %v9543_v42 = vpop.permute.xlu1 %4645 }
 0x157   : > { %vm5305_vm5 = vmor %vm5177_vm12, %vm5049_vm4  ;;  %7495 = vmatpush1.msk.msra.mxu0 %vm5155_vm7, %v7799_v49  ;;  %vm5279_vm12 = vcmp.gt.f32.partialorder %v9030_v62, %v7985_v45  ;;  %vm5169_vm4 = vcmp.gt.f32.partialorder %v8883_v54, %v7989_v46  ;;  %vm4750_vm7 = vcmp.eq.f32.partialorder %v8905_v19, %v7982_v44 }
 0x158   : > { %7549 = vmatpush1.msk.msra.mxu1 %vm5305_vm5, %v7799_v49  ;;  %vm5302_vm9 = vmor %vm5174_vm1, %vm4758_vm15  ;;  %7496 = vmatprep.subr.msk.mxu0 %vm5280_vm8, %v7799_v49  ;;  %vm4913_vm15 = vcmp.le.s32.totalorder %v4870_v18, %v8794_v57  ;;  %vm5276_vm1 = vcmp.gt.f32.partialorder %v9052_v7, %v7978_v43  ;;  %vm5166_vm5 = vcmp.gt.f32.partialorder %v8905_v19, %v7982_v44 }
 0x159   : > { %7550 = vmatprep.subr.msk.mxu1 %vm5302_vm9, %v7799_v49  ;;  %vm5045_vm13 = vmand %vm4757_vm0, %vm4917_vm2  ;;  %7497 = vmatpush2.msk.msra.mxu0 %vm5279_vm12, %v7799_v49  ;;  %vm5275_vm0 = vcmp.gt.f32.partialorder %v9052_v7, %v7985_v45  ;;  %vm4749_vm9 = vcmp.eq.f32.partialorder %v8905_v19, %v7989_v46 }
 0x15a   : > { %vm5301_vm3 = vmor %vm5173_vm6, %vm5045_vm13  ;;  %7498 = vmatprep.subr.msk.mxu0 %vm5276_vm1, %v7799_v49  ;;  %vm5272_vm6 = vcmp.gt.f32.partialorder %v9104_v2, %v7978_v43  ;;  %vm5165_vm13 = vcmp.gt.f32.partialorder %v8905_v19, %v7989_v46  ;;  %vm4746_vm1 = vcmp.eq.f32.partialorder %v8956_v3, %v7982_v44 }
 0x15b   : > { %7551 = vmatpush1.msk.msra.mxu1 %vm5301_vm3, %v7799_v49  ;;  %vm5298_vm2 = vmor %vm5170_vm11, %vm4754_vm10  ;;  %7499 = vmatpush2.msk.msra.mxu0 %vm5275_vm0, %v7799_v49  ;;  %vm4909_vm10 = vcmp.le.s32.totalorder %v4869_v10, %v8794_v57  ;;  %vm5271_vm11 = vcmp.gt.f32.partialorder %v9104_v2, %v7985_v45  ;;  %vm5162_vm3 = vcmp.gt.f32.partialorder %v8956_v3, %v7982_v44 }
 0x15c   : > { %7552 = vmatprep.subr.msk.mxu1 %vm5298_vm2, %v7799_v49  ;;  %vm5041_vm8 = vmand %vm4753_vm14, %vm4913_vm15  ;;  %7500 = vmatprep.subr.msk.mxu0 %vm5272_vm6, %v7799_v49  ;;  %vm5268_vm14 = vcmp.gt.f32.partialorder %v9126_v11, %v7978_v43  ;;  %vm4745_vm2 = vcmp.eq.f32.partialorder %v8956_v3, %v7989_v46 }
 0x15d   : > { %vm5297_vm12 = vmor %vm5169_vm4, %vm5041_vm8  ;;  %7501 = vmatpush2.msk.msra.mxu0 %vm5271_vm11, %v7799_v49  ;;  %vm5267_vm4 = vcmp.gt.f32.partialorder %v9126_v11, %v7985_v45  ;;  %vm5161_vm8 = vcmp.gt.f32.partialorder %v8956_v3, %v7989_v46  ;;  %vm4742_vm11 = vcmp.eq.f32.partialorder %v8978_v58, %v7982_v44 }
 0x15e   : > { %7553 = vmatpush1.msk.msra.mxu1 %vm5297_vm12, %v7799_v49  ;;  %vm5294_vm15 = vmor %vm5166_vm5, %vm4750_vm7  ;;  %7502 = vmatprep.subr.msk.mxu0 %vm5268_vm14, %v7799_v49  ;;  %vm4905_vm7 = vcmp.le.s32.totalorder %v4868_v23, %v8794_v57  ;;  %vm5264_vm5 = vcmp.gt.f32.partialorder %v9178_v6, %v7978_v43  ;;  %vm5158_vm12 = vcmp.gt.f32.partialorder %v8978_v58, %v7982_v44 }
 0x15f   : > { %7554 = vmatprep.subr.msk.mxu1 %vm5294_vm15, %v7799_v49  ;;  %vm5037_vm0 = vmand %vm4749_vm9, %vm4909_vm10  ;;  %7503 = vmatpush2.msk.msra.mxu0 %vm5267_vm4, %v7799_v49  ;;  %vm5263_vm9 = vcmp.gt.f32.partialorder %v9178_v6, %v7985_v45  ;;  %vm4741_vm15 = vcmp.eq.f32.partialorder %v8978_v58, %v7989_v46 }
 0x160   : > { %vm5293_vm6 = vmor %vm5165_vm13, %vm5037_vm0  ;;  %7504 = vmatprep.subr.msk.mxu0 %vm5264_vm5, %v7799_v49  ;;  %vm5260_vm13 = vcmp.gt.f32.partialorder %v9200_v15, %v7978_v43  ;;  %vm5157_vm0 = vcmp.gt.f32.partialorder %v8978_v58, %v7989_v46  ;;  %vm4866_vm5 = vcmp.eq.f32.partialorder %v9030_v62, %v7982_v44 }
 0x161   : > { %7555 = vmatpush1.msk.msra.mxu1 %vm5293_vm6, %v7799_v49  ;;  %vm5290_vm10 = vmor %vm5162_vm3, %vm4746_vm1  ;;  %7505 = vmatpush2.msk.msra.mxu0 %vm5263_vm9, %v7799_v49  ;;  %vm4901_vm1 = vcmp.le.s32.totalorder %v4867_v22, %v8794_v57  ;;  %vm5259_vm3 = vcmp.gt.f32.partialorder %v9200_v15, %v7985_v45  ;;  %vm5026_vm6 = vcmp.le.s32.totalorder %v4898_v32, %v9343_v31  ;;  %v9493_v57 = vpop.permute.xlu0 %4650 }
 0x162   : > { %7556 = vmatprep.subr.msk.mxu1 %vm5290_vm10, %v7799_v49  ;;  %vm5033_vm14 = vmand %vm4745_vm2, %vm4905_vm7  ;;  %7506 = vmatprep.subr.msk.mxu0 %vm5260_vm13, %v7799_v49  ;;  %vm5256_vm2 = vcmp.gt.f32.partialorder %v9252_v17, %v7978_v43  ;;  %vm5282_vm10 = vcmp.gt.f32.partialorder %v9030_v62, %v7982_v44  ;;  %vm4862_vm13 = vcmp.eq.f32.partialorder %v9052_v7, %v7982_v44 }
 0x163   : > { %vm5289_vm4 = vmor %vm5161_vm8, %vm5033_vm14  ;;  %7507 = vmatpush2.msk.msra.mxu0 %vm5259_vm3, %v7799_v49  ;;  %vm5255_vm8 = vcmp.gt.f32.partialorder %v9252_v17, %v7985_v45  ;;  %vm5022_vm14 = vcmp.le.s32.totalorder %v4897_v41, %v9343_v31  ;;  %vm5278_vm3 = vcmp.gt.f32.partialorder %v9052_v7, %v7982_v44 }
 0x164   : > { %7557 = vmatpush1.msk.msra.mxu1 %vm5289_vm4, %v7799_v49  ;;  %vm5286_vm7 = vmor %vm5158_vm12, %vm4742_vm11  ;;  %7508 = vmatprep.subr.msk.mxu0 %vm5256_vm2, %v7799_v49  ;;  %vm5252_vm11 = vcmp.gt.f32.partialorder %v9274_v20, %v7978_v43  ;;  %vm5248_vm4 = vcmp.gt.f32.partialorder %v9323_v27, %v7978_v43  ;;  %vm4858_vm2 = vcmp.eq.f32.partialorder %v9104_v2, %v7982_v44 }
 0x165   : > { %7558 = vmatprep.subr.msk.mxu1 %vm5286_vm7, %v7799_v49  ;;  %vm5029_vm9 = vmand %vm4741_vm15, %vm4901_vm1  ;;  %7509 = vmatpush2.msk.msra.mxu0 %vm5255_vm8, %v7799_v49  ;;  %vm5251_vm15 = vcmp.gt.f32.partialorder %v9274_v20, %v7985_v45  ;;  %vm5018_vm7 = vcmp.le.s32.totalorder %v4896_v26, %v9343_v31  ;;  %v9569_v25 = vpop.permute.xlu0 %4640 }
 0x166   : > { %vm5285_vm12 = vmor %vm5157_vm0, %vm5029_vm9  ;;  %7510 = vmatprep.subr.msk.mxu0 %vm5252_vm11, %v7799_v49  ;;  %vm5274_vm9 = vcmp.gt.f32.partialorder %v9104_v2, %v7982_v44 }
 0x167   : > { %7559 = vmatpush1.msk.msra.mxu1 %vm5285_vm12, %v7799_v49  ;;  %vm5154_vm1 = vmand %vm4866_vm5, %vm5026_vm6  ;;  %7511 = vmatpush2.msk.msra.mxu0 %vm5251_vm15, %v7799_v49  ;;  %vm5247_vm5 = vcmp.gt.f32.partialorder %v9323_v27, %v7985_v45  ;;  %vm5281_vm6 = vcmp.gt.f32.partialorder %v9030_v62, %v7989_v46  ;;  %vm4854_vm12 = vcmp.eq.f32.partialorder %v9126_v11, %v7982_v44 }
 0x168   : > { %vm5410_vm0 = vmor %vm5282_vm10, %vm5154_vm1  ;;  %7512 = vmatprep.subr.msk.mxu0 %vm5248_vm4, %v7799_v49  ;;  %vm5244_vm10 = vcmp.gt.f32.partialorder %v9349_v47, %v7978_v43  ;;  %vm5014_vm15 = vcmp.le.s32.totalorder %v4895_v30, %v9343_v31  ;;  %vm5240_vm4 = vcmp.gt.f32.partialorder %v9400_v28, %v7978_v43 }
 0x169   : > { %7560 = vmatprep.subr.msk.mxu1 %vm5410_vm0, %v7799_v49  ;;  %vm5150_vm8 = vmand %vm4862_vm13, %vm5022_vm14  ;;  %7513 = vmatpush2.msk.msra.mxu0 %vm5247_vm5, %v7799_v49  ;;  %vm5243_vm13 = vcmp.gt.f32.partialorder %v9349_v47, %v7985_v45  ;;  %vm5277_vm14 = vcmp.gt.f32.partialorder %v9052_v7, %v7989_v46  ;;  %vm4850_vm5 = vcmp.eq.f32.partialorder %v9178_v6, %v7982_v44 }
 0x16a   : > { %7561 = vmatpush2.msk.msra.mxu1 %vm5281_vm6, %v7799_v49  ;;  %vm5406_vm11 = vmor %vm5278_vm3, %vm5150_vm8  ;;  %7514 = vmatprep.subr.msk.mxu0 %vm5244_vm10, %v7799_v49  ;;  %vm5270_vm3 = vcmp.gt.f32.partialorder %v9126_v11, %v7982_v44  ;;  %vm5010_vm6 = vcmp.le.s32.totalorder %v4894_v33, %v9343_v31  ;;  %vm5236_vm10 = vcmp.gt.f32.partialorder %v9423_v51, %v7978_v43 }
 0x16b   : > { %7562 = vmatprep.subr.msk.mxu1 %vm5406_vm11, %v7799_v49  ;;  %vm5146_vm1 = vmand %vm4858_vm2, %vm5018_vm7  ;;  %7515 = vmatpush2.msk.msra.mxu0 %vm5243_vm13, %v7799_v49  ;;  %vm5239_vm2 = vcmp.gt.f32.partialorder %v9400_v28, %v7985_v45  ;;  %vm5273_vm7 = vcmp.gt.f32.partialorder %v9104_v2, %v7989_v46  ;;  %vm4846_vm13 = vcmp.eq.f32.partialorder %v9200_v15, %v7982_v44 }
 0x16c   : > { %7563 = vmatpush2.msk.msra.mxu1 %vm5277_vm14, %v7799_v49  ;;  %vm5402_vm0 = vmor %vm5274_vm9, %vm5146_vm1  ;;  %7516 = vmatprep.subr.msk.mxu0 %vm5240_vm4, %v7799_v49  ;;  %vm5266_vm9 = vcmp.gt.f32.partialorder %v9178_v6, %v7982_v44  ;;  %vm5006_vm14 = vcmp.le.s32.totalorder %v4893_v39, %v9343_v31  ;;  %vm5232_vm4 = vcmp.gt.f32.partialorder %v9470_v53, %v7978_v43 }
 0x16d   : > { %7564 = vmatprep.subr.msk.mxu1 %vm5402_vm0, %v7799_v49  ;;  %vm5142_vm8 = vmand %vm4854_vm12, %vm5014_vm15  ;;  %7517 = vmatpush2.msk.msra.mxu0 %vm5239_vm2, %v7799_v49  ;;  %vm5235_vm12 = vcmp.gt.f32.partialorder %v9423_v51, %v7985_v45  ;;  %vm5269_vm15 = vcmp.gt.f32.partialorder %v9126_v11, %v7989_v46  ;;  %vm4842_vm2 = vcmp.eq.f32.partialorder %v9252_v17, %v7982_v44 }
 0x16e   : > { %7565 = vmatpush2.msk.msra.mxu1 %vm5273_vm7, %v7799_v49  ;;  %vm5398_vm11 = vmor %vm5270_vm3, %vm5142_vm8  ;;  %7518 = vmatprep.subr.msk.mxu0 %vm5236_vm10, %v7799_v49  ;;  %vm5262_vm3 = vcmp.gt.f32.partialorder %v9200_v15, %v7982_v44  ;;  %vm5002_vm7 = vcmp.le.s32.totalorder %v4892_v50, %v9343_v31  ;;  %vm5228_vm10 = vcmp.gt.f32.partialorder %v9493_v57, %v7978_v43 }
 0x16f   : > { %7566 = vmatprep.subr.msk.mxu1 %vm5398_vm11, %v7799_v49  ;;  %vm5138_vm1 = vmand %vm4850_vm5, %vm5010_vm6  ;;  %7519 = vmatpush2.msk.msra.mxu0 %vm5235_vm12, %v7799_v49  ;;  %vm5231_vm5 = vcmp.gt.f32.partialorder %v9470_v53, %v7985_v45  ;;  %vm5265_vm6 = vcmp.gt.f32.partialorder %v9178_v6, %v7989_v46  ;;  %vm4838_vm12 = vcmp.eq.f32.partialorder %v9274_v20, %v7982_v44 }
 0x170   : > { %7567 = vmatpush2.msk.msra.mxu1 %vm5269_vm15, %v7799_v49  ;;  %vm5394_vm0 = vmor %vm5266_vm9, %vm5138_vm1  ;;  %7520 = vmatprep.subr.msk.mxu0 %vm5232_vm4, %v7799_v49  ;;  %vm5258_vm9 = vcmp.gt.f32.partialorder %v9252_v17, %v7982_v44  ;;  %vm4998_vm15 = vcmp.le.s32.totalorder %v4891_v55, %v9343_v31  ;;  %vm5224_vm4 = vcmp.gt.f32.partialorder %v9543_v42, %v7978_v43 }
 0x171   : > { %7568 = vmatprep.subr.msk.mxu1 %vm5394_vm0, %v7799_v49  ;;  %vm5134_vm8 = vmand %vm4846_vm13, %vm5006_vm14  ;;  %7521 = vmatpush2.msk.msra.mxu0 %vm5231_vm5, %v7799_v49  ;;  %vm5227_vm13 = vcmp.gt.f32.partialorder %v9493_v57, %v7985_v45  ;;  %vm5261_vm14 = vcmp.gt.f32.partialorder %v9200_v15, %v7989_v46  ;;  %vm4834_vm5 = vcmp.eq.f32.partialorder %v9323_v27, %v7982_v44 }
 0x172   : > { %7569 = vmatpush2.msk.msra.mxu1 %vm5265_vm6, %v7799_v49  ;;  %vm5390_vm11 = vmor %vm5262_vm3, %vm5134_vm8  ;;  %7522 = vmatprep.subr.msk.mxu0 %vm5228_vm10, %v7799_v49  ;;  %vm5254_vm3 = vcmp.gt.f32.partialorder %v9274_v20, %v7982_v44  ;;  %vm4994_vm6 = vcmp.le.s32.totalorder %v4890_v59, %v9343_v31  ;;  %vm5220_vm10 = vcmp.gt.f32.partialorder %v9569_v25, %v7978_v43  ;;  %v4886_v43 = vadd.s32 256, %v8681_v21 }
 0x173   : > { %7570 = vmatprep.subr.msk.mxu1 %vm5390_vm11, %v7799_v49  ;;  %vm5130_vm1 = vmand %vm4842_vm2, %vm5002_vm7  ;;  %7523 = vmatpush2.msk.msra.mxu0 %vm5227_vm13, %v7799_v49  ;;  %vm5223_vm2 = vcmp.gt.f32.partialorder %v9543_v42, %v7985_v45  ;;  %vm5257_vm7 = vcmp.gt.f32.partialorder %v9252_v17, %v7989_v46  ;;  %vm4830_vm13 = vcmp.eq.f32.partialorder %v9349_v47, %v7982_v44  ;;  %v4883_v21 = vadd.s32 256, %v8761_v34 }
 0x174   : > { %7571 = vmatpush2.msk.msra.mxu1 %vm5261_vm14, %v7799_v49  ;;  %vm5386_vm0 = vmor %vm5258_vm9, %vm5130_vm1  ;;  %7524 = vmatprep.subr.msk.mxu0 %vm5224_vm4, %v7799_v49  ;;  %vm5250_vm9 = vcmp.gt.f32.partialorder %v9323_v27, %v7982_v44  ;;  %vm4990_vm14 = vcmp.le.s32.totalorder %v4889_v1, %v9343_v31 }
 0x175   : > { %7572 = vmatprep.subr.msk.mxu1 %vm5386_vm0, %v7799_v49  ;;  %vm5126_vm8 = vmand %vm4838_vm12, %vm4998_vm15  ;;  %7525 = vmatpush2.msk.msra.mxu0 %vm5223_vm2, %v7799_v49  ;;  %vm5219_vm12 = vcmp.gt.f32.partialorder %v9569_v25, %v7985_v45  ;;  %vm5253_vm15 = vcmp.gt.f32.partialorder %v9274_v20, %v7989_v46  ;;  %vm4826_vm0 = vcmp.eq.f32.partialorder %v9400_v28, %v7982_v44  ;;  %v4885_v45 = vadd.s32 256, %v8706_v24  ;;  %v7673_v20 = vld [vmem:[%s7961_s19] sm:$0xf]  ;;  %s7686_s19 = scalar_lea.vmem %s5929_s17, 16 }
 0x176   : > { %7573 = vmatpush2.msk.msra.mxu1 %vm5257_vm7, %v7799_v49  ;;  %vm5382_vm11 = vmor %vm5254_vm3, %vm5126_vm8  ;;  %7526 = vmatprep.subr.msk.mxu0 %vm5220_vm10, %v7799_v49  ;;  %vm5246_vm3 = vcmp.gt.f32.partialorder %v9349_v47, %v7982_v44  ;;  %vm4986_vm2 = vcmp.le.s32.totalorder %v4888_v9, %v9343_v31  ;;  %vm5242_vm7 = vcmp.gt.f32.partialorder %v9400_v28, %v7982_v44  ;;  %p7687_p4 = scmp.ne.s32.totalorder %s5929_s17, %s7686_s19  ;;  %p7694_p8 = scmp.lt.s32.totalorder %s7692_s22, %s7686_s19 }
 0x177   : > { %7574 = vmatprep.subr.msk.mxu1 %vm5382_vm11, %v7799_v49  ;;  %vm5122_vm1 = vmand %vm4834_vm5, %vm4994_vm6  ;;  %7527 = vmatpush2.msk.msra.mxu0 %vm5219_vm12, %v7799_v49  ;;  %vm5249_vm5 = vcmp.gt.f32.partialorder %v9323_v27, %v7989_v46  ;;  %vm4982_vm10 = vcmp.le.s32.totalorder %v4887_v14, %v9343_v31  ;;  %vm5245_vm11 = vcmp.gt.f32.partialorder %v9349_v47, %v7989_v46 }
 0x178   : > { %7575 = vmatpush2.msk.msra.mxu1 %vm5253_vm15, %v7799_v49  ;;  %vm5378_vm4 = vmor %vm5250_vm9, %vm5122_vm1  ;;  %5736 = vmatmul.mubr.f32.vlgmr.msra.gmra.mxu0 %v8608_v13  ;;  %vm4822_vm9 = vcmp.eq.f32.partialorder %v9423_v51, %v7982_v44  ;;  %vm4818_vm15 = vcmp.eq.f32.partialorder %v9470_v53, %v7982_v44  ;;  %vm4978_vm1 = vcmp.le.s32.totalorder %v4886_v43, %v9343_v31  ;;  %p7688_p5 = pnand %p7687_p4, %p7876_p9  ;;  %p7695_p10 = por %p7694_p8, %p7693_p7 }
 0x179   : > { %7576 = vmatprep.subr.msk.mxu1 %vm5378_vm4, %v7799_v49  ;;  %vm5118_vm6 = vmand %vm4830_vm13, %vm4990_vm14  ;;  %vm5238_vm14 = vcmp.gt.f32.partialorder %v9423_v51, %v7982_v44 }
 0x17a   : > { %7577 = vmatpush2.msk.msra.mxu1 %vm5249_vm5, %v7799_v49  ;;  %vm5374_vm8 = vmor %vm5246_vm3, %vm5118_vm6  ;;  %vm5241_vm3 = vcmp.gt.f32.partialorder %v9400_v28, %v7989_v46  ;;  %vm4814_vm5 = vcmp.eq.f32.partialorder %v9493_v57, %v7982_v44  ;;  %vm4974_vm6 = vcmp.le.s32.totalorder %v4885_v45, %v9343_v31  ;;  %p7689_p6 = pneg %p7688_p5 }
 0x17b   : > { %7578 = vmatprep.subr.msk.mxu1 %vm5374_vm8, %v7799_v49  ;;  %vm5114_vm13 = vmand %vm4826_vm0, %vm4986_vm2  ;;  %vm5234_vm0 = vcmp.gt.f32.partialorder %v9470_v53, %v7982_v44 }
 0x17c   : > { %7579 = vmatpush2.msk.msra.mxu1 %vm5245_vm11, %v7799_v49  ;;  %vm5370_vm12 = vmor %vm5242_vm7, %vm5114_vm13  ;;  %vm5237_vm7 = vcmp.gt.f32.partialorder %v9423_v51, %v7989_v46  ;;  %vm4810_vm11 = vcmp.eq.f32.partialorder %v9543_v42, %v7982_v44  ;;  %vm4970_vm13 = vcmp.le.s32.totalorder %v4884_v16, %v9343_v31  ;;  %p7696_p11 = pnand %p7695_p10, %p7689_p6 }
 0x17d   : > { %7580 = vmatprep.subr.msk.mxu1 %vm5370_vm12, %v7799_v49  ;;  %vm5110_vm4 = vmand %vm4822_vm9, %vm4982_vm10  ;;  %vm5230_vm9 = vcmp.gt.f32.partialorder %v9493_v57, %v7982_v44 }
 0x17e   : > { %7581 = vmatpush2.msk.msra.mxu1 %vm5241_vm3, %v7799_v49  ;;  %vm5366_vm2 = vmor %vm5238_vm14, %vm5110_vm4  ;;  %vm5233_vm14 = vcmp.gt.f32.partialorder %v9470_v53, %v7989_v46  ;;  %vm4806_vm3 = vcmp.eq.f32.partialorder %v9569_v25, %v7982_v44  ;;  %vm4966_vm4 = vcmp.le.s32.totalorder %v4883_v21, %v9343_v31 }
 0x17f   : > { %7582 = vmatprep.subr.msk.mxu1 %vm5366_vm2, %v7799_v49  ;;  %vm5106_vm8 = vmand %vm4818_vm15, %vm4978_vm1  ;;  %vm5226_vm15 = vcmp.gt.f32.partialorder %v9543_v42, %v7982_v44 }
 0x180   : > { %7583 = vmatpush2.msk.msra.mxu1 %vm5237_vm7, %v7799_v49  ;;  %vm5362_vm10 = vmor %vm5234_vm0, %vm5106_vm8  ;;  %vm5229_vm0 = vcmp.gt.f32.partialorder %v9493_v57, %v7989_v46  ;;  %vm5225_vm7 = vcmp.gt.f32.partialorder %v9543_v42, %v7989_v46 }
 0x181   : > { %7584 = vmatprep.subr.msk.mxu1 %vm5362_vm10, %v7799_v49  ;;  %vm5102_vm12 = vmand %vm4814_vm5, %vm4974_vm6  ;;  %vm5222_vm5 = vcmp.gt.f32.partialorder %v9569_v25, %v7982_v44  ;;  %vm5221_vm10 = vcmp.gt.f32.partialorder %v9569_v25, %v7989_v46 }
 0x182   : > { %7585 = vmatpush2.msk.msra.mxu1 %vm5233_vm14, %v7799_v49  ;;  %vm5358_vm1 = vmor %vm5230_vm9, %vm5102_vm12 }
 0x183   : > { %7586 = vmatprep.subr.msk.mxu1 %vm5358_vm1, %v7799_v49  ;;  %vm5098_vm2 = vmand %vm4810_vm11, %vm4970_vm13  ;;  %vm5862_vm11 = vcmask 1040384  }
 0x184   : > { %7587 = vmatpush2.msk.msra.mxu1 %vm5229_vm0, %v7799_v49  ;;  %vm5354_vm6 = vmor %vm5226_vm15, %vm5098_vm2 }
 0x185   : > { %7588 = vmatprep.subr.msk.mxu1 %vm5354_vm6, %v7799_v49  ;;  %vm5094_vm8 = vmand %vm4806_vm3, %vm4966_vm4 }
 0x186   : > { %7589 = vmatpush2.msk.msra.mxu1 %vm5225_vm7, %v7799_v49  ;;  %vm5350_vm9 = vmor %vm5222_vm5, %vm5094_vm8 }
 0x187   : > { %7590 = vmatprep.subr.msk.mxu1 %vm5350_vm9, %v7799_v49 }
 0x188   : > { %7591 = vmatpush2.msk.msra.mxu1 %vm5221_vm10, %v7799_v49 }
 0x189   : > { %5807 = vmatmul.mubr.f32.vlgmr.msra.gmra.mxu1 %v8608_v13 }
 0x1f7   : > { %v2978_v44 = vpop.f32.mrf.mxu0 }
 0x1f8   : > { %v3049_v52 = vpop.f32.mrf.mxu1 }
 0x1f9   : > { %v2980_v24 = vpop.f32.mrf.mxu0 }
 0x1fa   : > { %v3051_v46 = vpop.f32.mrf.mxu1 }
 0x238   : > { %v5737_v29 = vpop.f32.mrf.mxu0 }
 0x239   : > { %v5813_v34 = vadd.f32 %v5737_v29, %v2978_v44 }
 0x23a   : > { %v5739_v48 = vpop.f32.mrf.mxu0 }
 0x23b   : > { %5817 = vst [vmem:[#allocation2] sm:$0xff] %v5813_v34  ;;  %v5814_v61 = vadd.f32 %v5739_v48, %v2980_v24 }
 0x23d   : > { %5818 = vst [vmem:[#allocation2 + $0x8] sm:$0xff] %v5814_v61 }
 0x249   : > { %v5808_v49 = vpop.f32.mrf.mxu1 }
 0x24a   : > { %v5815_v54 = vadd.f32 %v5808_v49, %v3049_v52 }
 0x24b   : > { %v5810_v13 = vpop.f32.mrf.mxu1 }
 0x24c   : > { %5819 = vst [vmem:[#allocation2 + $0x10] sm:$0xff] %v5815_v54  ;;  %v5816_v19 = vadd.f32 %v5810_v13, %v3051_v46 }
 0x24e   : > { %5820 = vst [vmem:[#allocation2 + $0x18] sm:$0xff] %v5816_v19 }
 0x255   : > { %v5821_v3 = vld [vmem:[#allocation2] ss:$8 sm:$0xf]  ;;  %v5823_v58 = vld [vmem:[#allocation2 + $0x1] ss:$8 sm:$0xf] }
 0x256   : > { %v5826_v4 = vadd.f32 %v5824_v63, %v5823_v58  ;;  %v7592_v60 = vadd.f32 -1.0, %v5823_v58  ;;  %v5831_v7 = vsub.f32 %v5821_v3, %v283_v56  ;;  %v5825_v2 = vsub.f32 %v5824_v63, %v5821_v3 }
 0x258   : > { %v5827_v62 = vsub.f32 %v5826_v4, %v5821_v3  ;;  %v5834_v8 = vadd.f32 %v7592_v60, %v5824_v63  ;;  %v5832_v5 = vsub.f32 %v5824_v63, %v5831_v7 }
 0x25a   : > { %7669 = vrcp.f32 %v5827_v62  ;;  %v5835_v0 = vsub.f32 %v5834_v8, %v5831_v7 }
 0x25c   : > { %7671 = vrcp.f32 %v5835_v0 }
 0x267   : > { %v7670_v11 = vpop.eup %7669 }
 0x268   : > { %v5829_v12 = vmul.f32 %v7670_v11, %v5825_v2 }
 0x269   : > { %v7672_v6 = vpop.eup %7671 }
 0x26a   : > { %v5837_v15 = vmul.f32 %v7672_v6, %v5832_v5  ;;  %v5830_v18 = vsub.f32 1.0, %v5829_v12 }
 0x26c   : > { %v5838_v10 = vsub.f32 1.0, %v5837_v15 }
 0x26e   : > { %v5839_v17 = vsub.f32 %v5830_v18, %v5838_v10 }
 0x270   : > { %v5840_v23 = vmul.f32 %v7673_v20, %v5839_v17 }
 0x272   : > { %v5845_v22 = vrot.slane %v5840_v23, %v7968_v38  ;;  %v5849_v27 = vrot.slane %v5840_v23, %v7964_v36  ;;  %v5853_v31 = vrot.slane %v5840_v23, %v2002_v40  ;;  %v5857_v32 = vrot.slane %v5840_v23, %v2006_v37 }
 0x273   : > { %v5895_v36 = vstv %s5894_s11 }
 0x274   : > { %v5863_v47 = vsel %vm5862_vm11, %v5845_v22, 0.0  ;;  %v5864_v41 = vsel %vm5862_vm11, %v5849_v27, 0.0  ;;  %v5866_v28 = vsel %vm5862_vm11, %v5853_v31, 0.0  ;;  %v5868_v51 = vsel %vm5862_vm11, %v5857_v32, 0.0  ;;  %5897 = vst [vmem:[%s255_s13] sm:$0x1] %v5895_v36 }
 0x275   : > { %v5865_v26 = vadd.f32 %v5864_v41, %v5863_v47 }
 0x277   : > { %v5867_v30 = vadd.f32 %v5866_v28, %v5865_v26 }
 0x279   : > { %v5869_v33 = vadd.f32 %v5868_v51, %v5867_v30 }
 0x27b   : > { %5870 = vadd.xlane.f32.xlu1 %v5869_v33 }
 0x27c   : > { %7699 = shalt.err (!%p7696_p11)
}
 0x27d   : > { %s7700_s29 = scalar_lea.hbm %s5926_s16, 16  ;;  %s7704_s13 = scalar_lea.hbm %s9807_s5, 64 }
 0x27e   : > { %p7701_p12 = scmp.ne.s32.totalorder %s5926_s16, %s7700_s29  ;;  %p7705_p2 = scmp.lt.s32.totalorder %s5926_s16, %s9807_s5 }
 0x27f   : > { %p7706_p4 = scmp.lt.s32.totalorder %s7704_s13, %s7700_s29 }
 0x280   : > { %p7702_p0 = pnand %p7701_p12, %p7876_p9 }
 0x281   : > { %p7707_p5 = por %p7706_p4, %p7705_p2 }
 0x282   : > { %p7703_p1 = pneg %p7702_p0 }
 0x284   : > { %p7708_p3 = pnand %p7707_p5, %p7703_p1 }
 0x286   : > { %7711 = shalt.err (!%p7708_p3)
}
 0x287   : > { %7601 = dma.vmem_to_hbm [thread:$0]  (%p7876_p9), %s5929_s17, 16, %s5926_s16, %s5903_s18   ;;  %v5885_v57 = vld [vmem:[#allocation3] sm:$0x1] }
 0x288   : > { %p9811_p6 = scmp.gt.s32.totalorder %s9714_s28, 0  ;;  %s249_s20 = scalar_lea.vmem [#allocation6], %s9729_s8 }
 0x289   : > { %s5915_s16 = sshll.u32 %s249_s20, 4  ;;  %s9761_s21 = scalar_lea.hbm %s9806_s4, %s7593_s12  ;;  %s5916_s16 = int_to_ptr.vmem [resolvable:$true] %s5915_s16 }
 0x28a   : > { %s5899_s22 = scalar_lea.sflag [#allocation7], %s9729_s8  ;;  %s7712_s29 = scalar_lea.vmem %s5916_s16, 16 }
 0x28b   : > { %p7713_p3 = scmp.ne.s32.totalorder %s5916_s16, %s7712_s29  ;;  %s7802_s28 = smov [#allocation6]  }
 0x28c   : > { %s7716_s6 = sshll.u32 %s7802_s28, 4  ;;  %s7717_s6 = int_to_ptr.vmem [resolvable:$false] %s7716_s6 }
 0x28d   : > { %p7714_p7 = pnand %p7713_p3, %p7876_p9  ;;  %s7718_s11 = scalar_lea.vmem %s7717_s6, 32 }
 0x28e   : > { %p7719_p10 = scmp.lt.s32.totalorder %s5916_s16, %s7717_s6  ;;  %p7720_p11 = scmp.lt.s32.totalorder %s7718_s11, %s7712_s29 }
 0x28f   : > { %p7715_p8 = pneg %p7714_p7 }
 0x290   : > { %p7721_p12 = por %p7720_p11, %p7719_p10 }
 0x292   : > { %p7722_p0 = pnand %p7721_p12, %p7715_p8 }
 0x304   : > { %v5871_v35 = vpop.xlane.xlu1 %5870 }
 0x305   : > { %v5872_v37 = vrot.slane %v5871_v35, 4 }
 0x307   : > { %v5873_v38 = vadd.f32 %v5872_v37, %v5871_v35 }
 0x309   : > { %v5874_v40 = vrot.slane %v5873_v38, 2 }
 0x30b   : > { %v5875_v39 = vadd.f32 %v5874_v40, %v5873_v38 }
 0x30d   : > { %v5876_v53 = vrot.slane %v5875_v39, 1 }
 0x30f   : > { %v5877_v50 = vadd.f32 %v5876_v53, %v5875_v39 }
 0x311   : > { %7598 = vpush %v5877_v50 }
 0x342   : > { %s7599_s19 = spop %7598 }
 0x343   : > { %s9820_s19 = smov (!%p9811_p6, %s7599_s19), 0.0 }
 0x344   : > { %v5886_v55 = vstv %s9820_s19 }
 0x345   : > { %v5887_v59 = vadd.f32 %v5886_v55, %v5885_v57 }
 0x347   : > { %5888 = vst [vmem:[#allocation3] sm:$0x1] %v5887_v59 }
 0x34e   : > { %v5892_v42 = vld [vmem:[#allocation3] sm:$0x1] }
 0x34f   : > { %5893 = vst [vmem:[%s249_s20] sm:$0x1] %v5892_v42 }
 0x350   : > { %7725 = shalt.err (!%p7722_p0)
}
 0x351   : > { %s7726_s25 = scalar_lea.hbm %s9761_s21, 16  ;;  %s7730_s13 = scalar_lea.hbm %s9806_s4, 64 }
 0x352   : > { %p7727_p1 = scmp.ne.s32.totalorder %s9761_s21, %s7726_s25  ;;  %p7731_p5 = scmp.lt.s32.totalorder %s9761_s21, %s9806_s4 }
 0x353   : > { %p7732_p6 = scmp.lt.s32.totalorder %s7730_s13, %s7726_s25 }
 0x354   : > { %p7728_p2 = pnand %p7727_p1, %p7876_p9 }
 0x355   : > { %p7733_p3 = por %p7732_p6, %p7731_p5 }
 0x356   : > { %p7729_p4 = pneg %p7728_p2 }
 0x358   : > { %p7734_p7 = pnand %p7733_p3, %p7729_p4 }
 0x35a   : > { %7737 = shalt.err (!%p7734_p7)
}
 0x35b   : > { %7600 = dma.vmem_to_hbm [thread:$0]  (%p7876_p9), %s5916_s16, 16, %s9761_s21, %s5899_s22  }
 0x35c PF: > { %p7611_p8 = scmp.ge.s32.totalorder %s7794_s27, 2  ;;  %s5940_s19 = sand.u32 1, %s7774_s23  }
 0x35d   : > { %s5941_s20 = scalar_lea.sflag [#allocation7], %s5940_s19 }
 0x35e   : > { %p7605_p10 = pnand %p7611_p8, %p7883_p13 }
 0x360   : > { %p7606_p11 = pneg %p7605_p10 }
 0x362   : > { %7765 = dma.done.wait (%p7606_p11), %s5941_s20, 16  }
 0x363   : > { %7767 = vsyncadd (%p7606_p11), %s5941_s20, 4294967280  ;;  %s5949_s17 = scalar_lea.sflag [#allocation9], %s5940_s19 }
 0x364   : > { %7769 = dma.done.wait (%p7606_p11), %s5949_s17, 16  }
 0x365   : > { %7771 = vsyncadd (%p7606_p11), %s5949_s17, 4294967280  ;;  %s28_s27 = sadd.s32 1, %s7794_s27   ;;  %s9812_s23 = smov %s7778_s0 }
 0x366   : > { %p25_p12 = scmp.ge.s32.totalorder %s28_s27, 6   ;;  %s9813_s0 = smov %s7782_s24 }
 0x367   : > { %s9814_s24 = smov %s7889_s10  ;;  %s9815_s25 = smov %s7790_s26 }
 0x368   : > { %s9816_s26 = smov %s9818_s30  ;;  %27 = sbr.rel (!%p25_p12) target bundleno = 21 (0x15), region = 124 }
 0x36d   :  { %5953 = vsyncpa [#allocation7], 1 }
 0x36e   :  { %5955 = vsyncpa [#allocation7 + $0x1], 1 }
 0x36f   :  { %5956 = vsyncpa [#allocation9], 1 }
 0x370   :  { %5958 = vsyncpa [#allocation9 + $0x1], 1 }

</bundles_post_ra>
